<compile_context>
chip_gen: v7x
topology: tpu7x:2x2x1
jax: 0.10.0
libtpu: 0.0.40
codegen_flags: <defaults>
</compile_context>

<pallas_src>
import jax
import jax.numpy as jnp
from jax.experimental import pallas as pl
from jax.experimental.pallas import tpu as pltpu  # noqa: F401  (TPU backend)

# ----------------------------- config -------------------------------------
VOCAB = 100
TYPE_VOCAB = 2
MAX_POS = 64
B, S, H = 2, 8, 32          # batch, seq, hidden
NH, DH = 4, 8               # heads, head dim (NH * DH == H)
FFN = 64                    # intermediate size
NLAYERS = 2
LN_EPS = 1e-12

LAYER_KEYS = ("wqkv", "bqkv", "wo", "bo", "ln1_g", "ln1_b",
              "w1", "b1", "w2", "b2", "ln2_g", "ln2_b")


def _layernorm(x, gamma, beta):
    mu = jnp.mean(x, axis=-1, keepdims=True)
    var = jnp.mean((x - mu) ** 2, axis=-1, keepdims=True)
    return (x - mu) * jax.lax.rsqrt(var + LN_EPS) * gamma + beta


# --------------------------- fused Pallas kernel ---------------------------
def fused_bert_kernel(emb_ref, bias_ref, g0_ref, b0_ref,
                      wqkv_ref, bqkv_ref, wo_ref, bo_ref, g1_ref, be1_ref,
                      w1_ref, b1_ref, w2_ref, b2_ref, g2_ref, be2_ref,
                      o_ref):
    # Embedding LayerNorm; batch already folded into rows ([B*S, H] comes in 2-D).
    x = _layernorm(emb_ref[...], g0_ref[...], b0_ref[...])

    # Additive attention bias arrives as [B, 1, S]; expand once to the
    # head-major [NH*B, 1, S] layout used by the batched score einsum
    # (leading-dim concat only — cheap, no lane relayout).
    bias = jnp.concatenate([bias_ref[...]] * NH, axis=0)

    def to_heads(t):    # [B*S, H] -> [NH*B, S, DH]  (head-major stacking)
        # Head dim is packed on lanes; static lane slices + leading-dim concat
        # is the Mosaic-safe relayout for putting it on a batch dim.
        return jnp.concatenate(
            [t[:, h * DH:(h + 1) * DH].reshape(B, S, DH) for h in range(NH)],
            axis=0)

    def from_heads(t):  # [NH*B, S, DH] -> [B*S, H]
        return jnp.concatenate(
            [t[h * B:(h + 1) * B].reshape(B * S, DH) for h in range(NH)],
            axis=-1)

    for l in range(NLAYERS):        # static unroll; all weights resident in VMEM
        # Fused QKV projection: one MXU launch with a 3H = 96-lane output.
        # 1/sqrt(DH) is pre-folded into the Q columns of wqkv/bqkv host-side.
        qkv = (jnp.dot(x.astype(jnp.bfloat16), wqkv_ref[l],
                       preferred_element_type=jnp.float32) + bqkv_ref[l])
        qh = to_heads(qkv[:, 0 * H:1 * H])
        kh = to_heads(qkv[:, 1 * H:2 * H])
        vh = to_heads(qkv[:, 2 * H:3 * H])

        # All heads + batches in one batched score matmul and one softmax.
        s = jnp.einsum('bqd,bkd->bqk',
                       qh.astype(jnp.bfloat16), kh.astype(jnp.bfloat16),
                       preferred_element_type=jnp.float32)
        s = s + bias
        s = s - jnp.max(s, axis=-1, keepdims=True)
        p = jnp.exp(s)
        # Exact division (matches torch.softmax).  pl.reciprocal(approx=True)
        # would move this to the EUP slot at ~1e-3 relative error.
        p = p / jnp.sum(p, axis=-1, keepdims=True)
        ctx = from_heads(jnp.einsum('bqk,bkd->bqd',
                                    p.astype(jnp.bfloat16),
                                    vh.astype(jnp.bfloat16),
                                    preferred_element_type=jnp.float32))

        attn = (jnp.dot(ctx.astype(jnp.bfloat16), wo_ref[l],
                        preferred_element_type=jnp.float32) + bo_ref[l])
        x = _layernorm(x + attn, g1_ref[l], be1_ref[l])

        h1 = (jnp.dot(x.astype(jnp.bfloat16), w1_ref[l],
                      preferred_element_type=jnp.float32) + b1_ref[l])
        # TODO(synk): HF BERT uses exact (erf) GELU; tanh approximation kept
        # here since erf has no guaranteed Mosaic lowering.
        h1 = jax.nn.gelu(h1, approximate=True)
        ffn = (jnp.dot(h1.astype(jnp.bfloat16), w2_ref[l],
                       preferred_element_type=jnp.float32) + b2_ref[l])
        x = _layernorm(x + ffn, g2_ref[l], be2_ref[l])

    # mean over sequence positions (matches torch .mean(dim=1)) -> [B, H]
    o_ref[...] = jnp.mean(x.reshape(B, S, H), axis=1)


# ------------------------------ wrapper -------------------------------------
def bert_text_forward(text_feats, video_feats, audio_feats, params):
    del video_feats, audio_feats   # unused by BERT_TEXT.forward
    ids = text_feats[:, 0]                       # [B, S] int32
    attn_mask = text_feats[:, 1].astype(jnp.float32)
    token_type = text_feats[:, 2]

    # embedding gathers (glue, plain JAX; fused by XLA around the kernel)
    emb = (params["word_emb"][ids]
           + params["pos_emb"][jnp.arange(S)][None, :, :]
           + params["type_emb"][token_type])     # [B, S, H]
    emb2d = emb.reshape(B * S, H)                # 2-D: no in-kernel 3D->2D relayout

    # extended attention mask: (1 - mask) * -10000, per batch (head expansion
    # happens in-kernel; NHx less HBM/DMA for the bias)
    mask_bias = ((1.0 - attn_mask) * -10000.0)[:, None, :]      # [B, 1, S]

    layer_args = [params[k] for k in LAYER_KEYS]
    # TODO(synk): at real BERT dims, switch to a layer-streaming grid axis
    # ("arbitrary", BlockSpec index_map lambda l: (l, 0, 0) on the stacked
    # weights) and add a "parallel" batch axis so v7x's second TensorCore and
    # double-buffered weight DMA are used; at this toy size a gridless single
    # program is faster (fixed per-step overhead dominates).
    features = pl.pallas_call(
        fused_bert_kernel,
        out_shape=jax.ShapeDtypeStruct((B, H), jnp.float32),
    )(emb2d, mask_bias, params["emb_ln_g"], params["emb_ln_b"], *layer_args)
    return features


# --------------------------- parameter init --------------------------------
def init_params(key):
    def nrm(k, shape, scale=0.02):
        return (scale * jax.random.normal(k, shape)).astype(jnp.float32)

    k_word, k_pos, k_type, k_layers = jax.random.split(key, 4)
    params = {
        "word_emb": nrm(k_word, (VOCAB, H)),
        "pos_emb":  nrm(k_pos, (MAX_POS, H)),
        "type_emb": nrm(k_type, (TYPE_VOCAB, H)),
        "emb_ln_g": jnp.ones((1, H), jnp.float32),
        "emb_ln_b": jnp.zeros((1, H), jnp.float32),
    }

    inv_sqrt_dh = 1.0 / (DH ** 0.5)
    layer_keys = jax.random.split(k_layers, NLAYERS)
    wqkv, wo, w1, w2 = [], [], [], []
    for k in layer_keys:
        ks = jax.random.split(k, 6)
        wq, wk, wv = nrm(ks[0], (H, H)), nrm(ks[1], (H, H)), nrm(ks[2], (H, H))
        # Fuse Q/K/V into one [H, 3H] weight; fold 1/sqrt(DH) into the Q part
        # (bq would also need scaling; it is zero here).
        wqkv.append(jnp.concatenate([wq * inv_sqrt_dh, wk, wv], axis=-1))
        wo.append(nrm(ks[3], (H, H)))
        w1.append(nrm(ks[4], (H, FFN)))
        w2.append(nrm(ks[5], (FFN, H)))

    # Matmul weights stacked [L, ...] and pre-cast to bf16 (MXU fast path on
    # v6e/v7x, halves resident-weight VMEM); biases / LN params stay f32.
    params["wqkv"] = jnp.stack(wqkv).astype(jnp.bfloat16)   # [L, H, 3H]
    params["wo"] = jnp.stack(wo).astype(jnp.bfloat16)       # [L, H, H]
    params["w1"] = jnp.stack(w1).astype(jnp.bfloat16)       # [L, H, FFN]
    params["w2"] = jnp.stack(w2).astype(jnp.bfloat16)       # [L, FFN, H]

    zeros_h = jnp.zeros((NLAYERS, 1, H), jnp.float32)
    ones_h = jnp.ones((NLAYERS, 1, H), jnp.float32)
    params.update(
        bqkv=jnp.zeros((NLAYERS, 1, 3 * H), jnp.float32),
        bo=zeros_h,
        ln1_g=ones_h, ln1_b=zeros_h,
        b1=jnp.zeros((NLAYERS, 1, FFN), jnp.float32),
        b2=zeros_h,
        ln2_g=ones_h, ln2_b=zeros_h,
    )
    return params


# -------------------------------- main -------------------------------------
if __name__ == "__main__":
    key = jax.random.PRNGKey(0)
    k_ids, k_params = jax.random.split(key)

    ids = jax.random.randint(k_ids, (B, S), 0, VOCAB, dtype=jnp.int32)
    lens = jnp.array([S, S - 2], dtype=jnp.int32)
    attn_mask = (jnp.arange(S)[None, :] < lens[:, None]).astype(jnp.int32)
    token_type = jnp.zeros((B, S), dtype=jnp.int32)
    text_feats = jnp.stack([ids, attn_mask, token_type], axis=1)   # [B, 3, S]

    # unused modality placeholders (BERT_TEXT ignores them)
    video_feats = jnp.zeros((B, S, 16), jnp.float32)
    audio_feats = jnp.zeros((B, S, 16), jnp.float32)

    params = init_params(k_params)

    fwd = jax.jit(bert_text_forward)
    features = fwd(text_feats, video_feats, audio_feats, params)
    features = jax.block_until_ready(features)

    assert features.shape == (B, H), features.shape
    assert bool(jnp.all(jnp.isfinite(features)))
    print("KERNEL_OK")
</pallas_src>

<mosaic_0001>
module attributes {stable_mosaic.version = 11 : i64} {
  func.func @fused_bert_kernel(%arg0: memref<16x32xf32, #tpu.memory_space<vmem>>, %arg1: memref<2x1x8xf32, #tpu.memory_space<vmem>>, %arg2: memref<1x32xf32, #tpu.memory_space<vmem>>, %arg3: memref<1x32xf32, #tpu.memory_space<vmem>>, %arg4: memref<2x32x96xbf16, #tpu.memory_space<vmem>>, %arg5: memref<2x1x96xf32, #tpu.memory_space<vmem>>, %arg6: memref<2x32x32xbf16, #tpu.memory_space<vmem>>, %arg7: memref<2x1x32xf32, #tpu.memory_space<vmem>>, %arg8: memref<2x1x32xf32, #tpu.memory_space<vmem>>, %arg9: memref<2x1x32xf32, #tpu.memory_space<vmem>>, %arg10: memref<2x32x64xbf16, #tpu.memory_space<vmem>>, %arg11: memref<2x1x64xf32, #tpu.memory_space<vmem>>, %arg12: memref<2x64x32xbf16, #tpu.memory_space<vmem>>, %arg13: memref<2x1x32xf32, #tpu.memory_space<vmem>>, %arg14: memref<2x1x32xf32, #tpu.memory_space<vmem>>, %arg15: memref<2x1x32xf32, #tpu.memory_space<vmem>>, %arg16: memref<2x32xf32, #tpu.memory_space<vmem>>) attributes {dimension_semantics = [], scalar_prefetch = 0 : i64, scratch_operands = 0 : i64, tpu.core_type = #tpu.core_type<tc>} {
    %c0 = arith.constant 0 : index
    %c0_0 = arith.constant 0 : index
    %0 = vector.load %arg0[%c0, %c0_0] : memref<16x32xf32, #tpu.memory_space<vmem>>, vector<16x32xf32>
    %c0_1 = arith.constant 0 : index
    %c0_2 = arith.constant 0 : index
    %1 = vector.load %arg2[%c0_1, %c0_2] : memref<1x32xf32, #tpu.memory_space<vmem>>, vector<1x32xf32>
    %c0_3 = arith.constant 0 : index
    %c0_4 = arith.constant 0 : index
    %2 = vector.load %arg3[%c0_3, %c0_4] : memref<1x32xf32, #tpu.memory_space<vmem>>, vector<1x32xf32>
    %cst = arith.constant dense<0.000000e+00> : vector<16xf32>
    %3 = vector.multi_reduction <add>, %0, %cst [1] : vector<16x32xf32> to vector<16xf32>
    %4 = vector.shape_cast %3 : vector<16xf32> to vector<16x1xf32>
    %cst_5 = arith.constant 3.200000e+01 : f32
    %5 = vector.broadcast %cst_5 : f32 to vector<16x1xf32>
    %6 = arith.divf %4, %5 : vector<16x1xf32>
    %7 = vector.broadcast %6 : vector<16x1xf32> to vector<16x32xf32>
    %8 = arith.subf %0, %7 : vector<16x32xf32>
    %9 = arith.mulf %8, %8 : vector<16x32xf32>
    %cst_6 = arith.constant dense<0.000000e+00> : vector<16xf32>
    %10 = vector.multi_reduction <add>, %9, %cst_6 [1] : vector<16x32xf32> to vector<16xf32>
    %11 = vector.shape_cast %10 : vector<16xf32> to vector<16x1xf32>
    %cst_7 = arith.constant 3.200000e+01 : f32
    %12 = vector.broadcast %cst_7 : f32 to vector<16x1xf32>
    %13 = arith.divf %11, %12 : vector<16x1xf32>
    %14 = vector.broadcast %6 : vector<16x1xf32> to vector<16x32xf32>
    %15 = arith.subf %0, %14 : vector<16x32xf32>
    %cst_8 = arith.constant 9.99999996E-13 : f32
    %16 = vector.broadcast %cst_8 : f32 to vector<16x1xf32>
    %17 = arith.addf %13, %16 : vector<16x1xf32>
    %18 = math.rsqrt %17 : vector<16x1xf32>
    %19 = vector.broadcast %18 : vector<16x1xf32> to vector<16x32xf32>
    %20 = arith.mulf %15, %19 : vector<16x32xf32>
    %21 = vector.broadcast %1 : vector<1x32xf32> to vector<16x32xf32>
    %22 = arith.mulf %20, %21 : vector<16x32xf32>
    %23 = vector.broadcast %2 : vector<1x32xf32> to vector<16x32xf32>
    %24 = arith.addf %22, %23 : vector<16x32xf32>
    %c0_9 = arith.constant 0 : index
    %c0_10 = arith.constant 0 : index
    %c0_11 = arith.constant 0 : index
    %25 = vector.load %arg1[%c0_9, %c0_10, %c0_11] : memref<2x1x8xf32, #tpu.memory_space<vmem>>, vector<2x1x8xf32>
    %26 = tpu.concatenate %25, %25, %25, %25 in 0 : vector<2x1x8xf32>, vector<2x1x8xf32>, vector<2x1x8xf32>, vector<2x1x8xf32> -> vector<8x1x8xf32>
    %27 = arith.truncf %24 : vector<16x32xf32> to vector<16x32xbf16>
    %c0_12 = arith.constant 0 : index
    %c0_13 = arith.constant 0 : index
    %c0_14 = arith.constant 0 : index
    %28 = vector.load %arg4[%c0_12, %c0_13, %c0_14] : memref<2x32x96xbf16, #tpu.memory_space<vmem>>, vector<1x32x96xbf16>
    %29 = vector.shape_cast %28 : vector<1x32x96xbf16> to vector<32x96xbf16>
    %cst_15 = arith.constant dense<0.000000e+00> : vector<16x96xf32>
    %30 = tpu.matmul %27, %29, %cst_15 {dimension_numbers = #tpu.dot_dimension_numbers<[1], [0], [0], [1], [0, 0, 1, 1], [], []>} : vector<16x32xbf16>, vector<32x96xbf16>, vector<16x96xf32> -> vector<16x96xf32>
    %c0_16 = arith.constant 0 : index
    %c0_17 = arith.constant 0 : index
    %c0_18 = arith.constant 0 : index
    %31 = vector.load %arg5[%c0_16, %c0_17, %c0_18] : memref<2x1x96xf32, #tpu.memory_space<vmem>>, vector<1x1x96xf32>
    %32 = vector.shape_cast %31 : vector<1x1x96xf32> to vector<1x96xf32>
    %33 = vector.broadcast %32 : vector<1x96xf32> to vector<16x96xf32>
    %34 = arith.addf %30, %33 : vector<16x96xf32>
    %35 = vector.extract_strided_slice %34 {offsets = [0, 0], sizes = [16, 32], strides = [1, 1]} : vector<16x96xf32> to vector<16x32xf32>
    %36 = vector.extract_strided_slice %35 {offsets = [0, 0], sizes = [16, 8], strides = [1, 1]} : vector<16x32xf32> to vector<16x8xf32>
    %37 = vector.shape_cast %36 : vector<16x8xf32> to vector<2x8x8xf32>
    %38 = vector.extract_strided_slice %35 {offsets = [0, 8], sizes = [16, 8], strides = [1, 1]} : vector<16x32xf32> to vector<16x8xf32>
    %39 = vector.shape_cast %38 : vector<16x8xf32> to vector<2x8x8xf32>
    %40 = vector.extract_strided_slice %35 {offsets = [0, 16], sizes = [16, 8], strides = [1, 1]} : vector<16x32xf32> to vector<16x8xf32>
    %41 = vector.shape_cast %40 : vector<16x8xf32> to vector<2x8x8xf32>
    %42 = vector.extract_strided_slice %35 {offsets = [0, 24], sizes = [16, 8], strides = [1, 1]} : vector<16x32xf32> to vector<16x8xf32>
    %43 = vector.shape_cast %42 : vector<16x8xf32> to vector<2x8x8xf32>
    %44 = tpu.concatenate %37, %39, %41, %43 in 0 : vector<2x8x8xf32>, vector<2x8x8xf32>, vector<2x8x8xf32>, vector<2x8x8xf32> -> vector<8x8x8xf32>
    %45 = vector.extract_strided_slice %34 {offsets = [0, 32], sizes = [16, 32], strides = [1, 1]} : vector<16x96xf32> to vector<16x32xf32>
    %46 = vector.extract_strided_slice %45 {offsets = [0, 0], sizes = [16, 8], strides = [1, 1]} : vector<16x32xf32> to vector<16x8xf32>
    %47 = vector.shape_cast %46 : vector<16x8xf32> to vector<2x8x8xf32>
    %48 = vector.extract_strided_slice %45 {offsets = [0, 8], sizes = [16, 8], strides = [1, 1]} : vector<16x32xf32> to vector<16x8xf32>
    %49 = vector.shape_cast %48 : vector<16x8xf32> to vector<2x8x8xf32>
    %50 = vector.extract_strided_slice %45 {offsets = [0, 16], sizes = [16, 8], strides = [1, 1]} : vector<16x32xf32> to vector<16x8xf32>
    %51 = vector.shape_cast %50 : vector<16x8xf32> to vector<2x8x8xf32>
    %52 = vector.extract_strided_slice %45 {offsets = [0, 24], sizes = [16, 8], strides = [1, 1]} : vector<16x32xf32> to vector<16x8xf32>
    %53 = vector.shape_cast %52 : vector<16x8xf32> to vector<2x8x8xf32>
    %54 = tpu.concatenate %47, %49, %51, %53 in 0 : vector<2x8x8xf32>, vector<2x8x8xf32>, vector<2x8x8xf32>, vector<2x8x8xf32> -> vector<8x8x8xf32>
    %55 = vector.extract_strided_slice %34 {offsets = [0, 64], sizes = [16, 32], strides = [1, 1]} : vector<16x96xf32> to vector<16x32xf32>
    %56 = vector.extract_strided_slice %55 {offsets = [0, 0], sizes = [16, 8], strides = [1, 1]} : vector<16x32xf32> to vector<16x8xf32>
    %57 = vector.shape_cast %56 : vector<16x8xf32> to vector<2x8x8xf32>
    %58 = vector.extract_strided_slice %55 {offsets = [0, 8], sizes = [16, 8], strides = [1, 1]} : vector<16x32xf32> to vector<16x8xf32>
    %59 = vector.shape_cast %58 : vector<16x8xf32> to vector<2x8x8xf32>
    %60 = vector.extract_strided_slice %55 {offsets = [0, 16], sizes = [16, 8], strides = [1, 1]} : vector<16x32xf32> to vector<16x8xf32>
    %61 = vector.shape_cast %60 : vector<16x8xf32> to vector<2x8x8xf32>
    %62 = vector.extract_strided_slice %55 {offsets = [0, 24], sizes = [16, 8], strides = [1, 1]} : vector<16x32xf32> to vector<16x8xf32>
    %63 = vector.shape_cast %62 : vector<16x8xf32> to vector<2x8x8xf32>
    %64 = tpu.concatenate %57, %59, %61, %63 in 0 : vector<2x8x8xf32>, vector<2x8x8xf32>, vector<2x8x8xf32>, vector<2x8x8xf32> -> vector<8x8x8xf32>
    %65 = arith.truncf %44 : vector<8x8x8xf32> to vector<8x8x8xbf16>
    %66 = arith.truncf %54 : vector<8x8x8xf32> to vector<8x8x8xbf16>
    "tpu.trace_start"() <{level = 10 : i32, message = "bqd,bkd->bqk"}> : () -> ()
    %cst_19 = arith.constant dense<0.000000e+00> : vector<8x8x8xf32>
    %67 = tpu.matmul %65, %66, %cst_19 {dimension_numbers = #tpu.dot_dimension_numbers<[2], [2], [1], [1], [0, 0, 0, 1, 1, 1], [0], [0]>} : vector<8x8x8xbf16>, vector<8x8x8xbf16>, vector<8x8x8xf32> -> vector<8x8x8xf32>
    "tpu.trace_stop"() : () -> ()
    %68 = vector.broadcast %26 : vector<8x1x8xf32> to vector<8x8x8xf32>
    %69 = arith.addf %67, %68 : vector<8x8x8xf32>
    %cst_20 = arith.constant dense<0xFF800000> : vector<8x8xf32>
    %70 = vector.multi_reduction <maximumf>, %69, %cst_20 [2] : vector<8x8x8xf32> to vector<8x8xf32>
    %71 = vector.shape_cast %70 : vector<8x8xf32> to vector<8x8x1xf32>
    %72 = vector.broadcast %71 : vector<8x8x1xf32> to vector<8x8x8xf32>
    %73 = arith.subf %69, %72 : vector<8x8x8xf32>
    %74 = math.exp %73 : vector<8x8x8xf32>
    %cst_21 = arith.constant dense<0.000000e+00> : vector<8x8xf32>
    %75 = vector.multi_reduction <add>, %74, %cst_21 [2] : vector<8x8x8xf32> to vector<8x8xf32>
    %76 = vector.shape_cast %75 : vector<8x8xf32> to vector<8x8x1xf32>
    %77 = vector.broadcast %76 : vector<8x8x1xf32> to vector<8x8x8xf32>
    %78 = arith.divf %74, %77 : vector<8x8x8xf32>
    %79 = arith.truncf %78 : vector<8x8x8xf32> to vector<8x8x8xbf16>
    %80 = arith.truncf %64 : vector<8x8x8xf32> to vector<8x8x8xbf16>
    "tpu.trace_start"() <{level = 10 : i32, message = "bqk,bkd->bqd"}> : () -> ()
    %cst_22 = arith.constant dense<0.000000e+00> : vector<8x8x8xf32>
    %81 = tpu.matmul %79, %80, %cst_22 {dimension_numbers = #tpu.dot_dimension_numbers<[2], [1], [1], [2], [0, 0, 0, 1, 1, 2], [0], [0]>} : vector<8x8x8xbf16>, vector<8x8x8xbf16>, vector<8x8x8xf32> -> vector<8x8x8xf32>
    "tpu.trace_stop"() : () -> ()
    %82 = vector.extract_strided_slice %81 {offsets = [0, 0, 0], sizes = [2, 8, 8], strides = [1, 1, 1]} : vector<8x8x8xf32> to vector<2x8x8xf32>
    %83 = vector.shape_cast %82 : vector<2x8x8xf32> to vector<16x8xf32>
    %84 = vector.extract_strided_slice %81 {offsets = [2, 0, 0], sizes = [2, 8, 8], strides = [1, 1, 1]} : vector<8x8x8xf32> to vector<2x8x8xf32>
    %85 = vector.shape_cast %84 : vector<2x8x8xf32> to vector<16x8xf32>
    %86 = vector.extract_strided_slice %81 {offsets = [4, 0, 0], sizes = [2, 8, 8], strides = [1, 1, 1]} : vector<8x8x8xf32> to vector<2x8x8xf32>
    %87 = vector.shape_cast %86 : vector<2x8x8xf32> to vector<16x8xf32>
    %88 = vector.extract_strided_slice %81 {offsets = [6, 0, 0], sizes = [2, 8, 8], strides = [1, 1, 1]} : vector<8x8x8xf32> to vector<2x8x8xf32>
    %89 = vector.shape_cast %88 : vector<2x8x8xf32> to vector<16x8xf32>
    %90 = tpu.concatenate %83, %85, %87, %89 in 1 : vector<16x8xf32>, vector<16x8xf32>, vector<16x8xf32>, vector<16x8xf32> -> vector<16x32xf32>
    %91 = arith.truncf %90 : vector<16x32xf32> to vector<16x32xbf16>
    %c0_23 = arith.constant 0 : index
    %c0_24 = arith.constant 0 : index
    %c0_25 = arith.constant 0 : index
    %92 = vector.load %arg6[%c0_23, %c0_24, %c0_25] : memref<2x32x32xbf16, #tpu.memory_space<vmem>>, vector<1x32x32xbf16>
    %93 = vector.shape_cast %92 : vector<1x32x32xbf16> to vector<32x32xbf16>
    %cst_26 = arith.constant dense<0.000000e+00> : vector<16x32xf32>
    %94 = tpu.matmul %91, %93, %cst_26 {dimension_numbers = #tpu.dot_dimension_numbers<[1], [0], [0], [1], [0, 0, 1, 1], [], []>} : vector<16x32xbf16>, vector<32x32xbf16>, vector<16x32xf32> -> vector<16x32xf32>
    %c0_27 = arith.constant 0 : index
    %c0_28 = arith.constant 0 : index
    %c0_29 = arith.constant 0 : index
    %95 = vector.load %arg7[%c0_27, %c0_28, %c0_29] : memref<2x1x32xf32, #tpu.memory_space<vmem>>, vector<1x1x32xf32>
    %96 = vector.shape_cast %95 : vector<1x1x32xf32> to vector<1x32xf32>
    %97 = vector.broadcast %96 : vector<1x32xf32> to vector<16x32xf32>
    %98 = arith.addf %94, %97 : vector<16x32xf32>
    %99 = arith.addf %24, %98 : vector<16x32xf32>
    %c0_30 = arith.constant 0 : index
    %c0_31 = arith.constant 0 : index
    %c0_32 = arith.constant 0 : index
    %100 = vector.load %arg8[%c0_30, %c0_31, %c0_32] : memref<2x1x32xf32, #tpu.memory_space<vmem>>, vector<1x1x32xf32>
    %101 = vector.shape_cast %100 : vector<1x1x32xf32> to vector<1x32xf32>
    %c0_33 = arith.constant 0 : index
    %c0_34 = arith.constant 0 : index
    %c0_35 = arith.constant 0 : index
    %102 = vector.load %arg9[%c0_33, %c0_34, %c0_35] : memref<2x1x32xf32, #tpu.memory_space<vmem>>, vector<1x1x32xf32>
    %103 = vector.shape_cast %102 : vector<1x1x32xf32> to vector<1x32xf32>
    %cst_36 = arith.constant dense<0.000000e+00> : vector<16xf32>
    %104 = vector.multi_reduction <add>, %99, %cst_36 [1] : vector<16x32xf32> to vector<16xf32>
    %105 = vector.shape_cast %104 : vector<16xf32> to vector<16x1xf32>
    %cst_37 = arith.constant 3.200000e+01 : f32
    %106 = vector.broadcast %cst_37 : f32 to vector<16x1xf32>
    %107 = arith.divf %105, %106 : vector<16x1xf32>
    %108 = vector.broadcast %107 : vector<16x1xf32> to vector<16x32xf32>
    %109 = arith.subf %99, %108 : vector<16x32xf32>
    %110 = arith.mulf %109, %109 : vector<16x32xf32>
    %cst_38 = arith.constant dense<0.000000e+00> : vector<16xf32>
    %111 = vector.multi_reduction <add>, %110, %cst_38 [1] : vector<16x32xf32> to vector<16xf32>
    %112 = vector.shape_cast %111 : vector<16xf32> to vector<16x1xf32>
    %cst_39 = arith.constant 3.200000e+01 : f32
    %113 = vector.broadcast %cst_39 : f32 to vector<16x1xf32>
    %114 = arith.divf %112, %113 : vector<16x1xf32>
    %115 = vector.broadcast %107 : vector<16x1xf32> to vector<16x32xf32>
    %116 = arith.subf %99, %115 : vector<16x32xf32>
    %cst_40 = arith.constant 9.99999996E-13 : f32
    %117 = vector.broadcast %cst_40 : f32 to vector<16x1xf32>
    %118 = arith.addf %114, %117 : vector<16x1xf32>
    %119 = math.rsqrt %118 : vector<16x1xf32>
    %120 = vector.broadcast %119 : vector<16x1xf32> to vector<16x32xf32>
    %121 = arith.mulf %116, %120 : vector<16x32xf32>
    %122 = vector.broadcast %101 : vector<1x32xf32> to vector<16x32xf32>
    %123 = arith.mulf %121, %122 : vector<16x32xf32>
    %124 = vector.broadcast %103 : vector<1x32xf32> to vector<16x32xf32>
    %125 = arith.addf %123, %124 : vector<16x32xf32>
    %126 = arith.truncf %125 : vector<16x32xf32> to vector<16x32xbf16>
    %c0_41 = arith.constant 0 : index
    %c0_42 = arith.constant 0 : index
    %c0_43 = arith.constant 0 : index
    %127 = vector.load %arg10[%c0_41, %c0_42, %c0_43] : memref<2x32x64xbf16, #tpu.memory_space<vmem>>, vector<1x32x64xbf16>
    %128 = vector.shape_cast %127 : vector<1x32x64xbf16> to vector<32x64xbf16>
    %cst_44 = arith.constant dense<0.000000e+00> : vector<16x64xf32>
    %129 = tpu.matmul %126, %128, %cst_44 {dimension_numbers = #tpu.dot_dimension_numbers<[1], [0], [0], [1], [0, 0, 1, 1], [], []>} : vector<16x32xbf16>, vector<32x64xbf16>, vector<16x64xf32> -> vector<16x64xf32>
    %c0_45 = arith.constant 0 : index
    %c0_46 = arith.constant 0 : index
    %c0_47 = arith.constant 0 : index
    %130 = vector.load %arg11[%c0_45, %c0_46, %c0_47] : memref<2x1x64xf32, #tpu.memory_space<vmem>>, vector<1x1x64xf32>
    %131 = vector.shape_cast %130 : vector<1x1x64xf32> to vector<1x64xf32>
    %132 = vector.broadcast %131 : vector<1x64xf32> to vector<16x64xf32>
    %133 = arith.addf %129, %132 : vector<16x64xf32>
    %134 = arith.mulf %133, %133 : vector<16x64xf32>
    %135 = arith.mulf %133, %134 : vector<16x64xf32>
    %cst_48 = arith.constant 4.471500e-02 : f32
    %136 = vector.broadcast %cst_48 : f32 to vector<16x64xf32>
    %137 = arith.mulf %136, %135 : vector<16x64xf32>
    %138 = arith.addf %133, %137 : vector<16x64xf32>
    %cst_49 = arith.constant 0.797884583 : f32
    %139 = vector.broadcast %cst_49 : f32 to vector<16x64xf32>
    %140 = arith.mulf %139, %138 : vector<16x64xf32>
    %141 = math.tanh %140 : vector<16x64xf32>
    %cst_50 = arith.constant 1.000000e+00 : f32
    %142 = vector.broadcast %cst_50 : f32 to vector<16x64xf32>
    %143 = arith.addf %142, %141 : vector<16x64xf32>
    %cst_51 = arith.constant 5.000000e-01 : f32
    %144 = vector.broadcast %cst_51 : f32 to vector<16x64xf32>
    %145 = arith.mulf %144, %143 : vector<16x64xf32>
    %146 = arith.mulf %133, %145 : vector<16x64xf32>
    %147 = arith.truncf %146 : vector<16x64xf32> to vector<16x64xbf16>
    %c0_52 = arith.constant 0 : index
    %c0_53 = arith.constant 0 : index
    %c0_54 = arith.constant 0 : index
    %148 = vector.load %arg12[%c0_52, %c0_53, %c0_54] : memref<2x64x32xbf16, #tpu.memory_space<vmem>>, vector<1x64x32xbf16>
    %149 = vector.shape_cast %148 : vector<1x64x32xbf16> to vector<64x32xbf16>
    %cst_55 = arith.constant dense<0.000000e+00> : vector<16x32xf32>
    %150 = tpu.matmul %147, %149, %cst_55 {dimension_numbers = #tpu.dot_dimension_numbers<[1], [0], [0], [1], [0, 0, 1, 1], [], []>} : vector<16x64xbf16>, vector<64x32xbf16>, vector<16x32xf32> -> vector<16x32xf32>
    %c0_56 = arith.constant 0 : index
    %c0_57 = arith.constant 0 : index
    %c0_58 = arith.constant 0 : index
    %151 = vector.load %arg13[%c0_56, %c0_57, %c0_58] : memref<2x1x32xf32, #tpu.memory_space<vmem>>, vector<1x1x32xf32>
    %152 = vector.shape_cast %151 : vector<1x1x32xf32> to vector<1x32xf32>
    %153 = vector.broadcast %152 : vector<1x32xf32> to vector<16x32xf32>
    %154 = arith.addf %150, %153 : vector<16x32xf32>
    %155 = arith.addf %125, %154 : vector<16x32xf32>
    %c0_59 = arith.constant 0 : index
    %c0_60 = arith.constant 0 : index
    %c0_61 = arith.constant 0 : index
    %156 = vector.load %arg14[%c0_59, %c0_60, %c0_61] : memref<2x1x32xf32, #tpu.memory_space<vmem>>, vector<1x1x32xf32>
    %157 = vector.shape_cast %156 : vector<1x1x32xf32> to vector<1x32xf32>
    %c0_62 = arith.constant 0 : index
    %c0_63 = arith.constant 0 : index
    %c0_64 = arith.constant 0 : index
    %158 = vector.load %arg15[%c0_62, %c0_63, %c0_64] : memref<2x1x32xf32, #tpu.memory_space<vmem>>, vector<1x1x32xf32>
    %159 = vector.shape_cast %158 : vector<1x1x32xf32> to vector<1x32xf32>
    %cst_65 = arith.constant dense<0.000000e+00> : vector<16xf32>
    %160 = vector.multi_reduction <add>, %155, %cst_65 [1] : vector<16x32xf32> to vector<16xf32>
    %161 = vector.shape_cast %160 : vector<16xf32> to vector<16x1xf32>
    %cst_66 = arith.constant 3.200000e+01 : f32
    %162 = vector.broadcast %cst_66 : f32 to vector<16x1xf32>
    %163 = arith.divf %161, %162 : vector<16x1xf32>
    %164 = vector.broadcast %163 : vector<16x1xf32> to vector<16x32xf32>
    %165 = arith.subf %155, %164 : vector<16x32xf32>
    %166 = arith.mulf %165, %165 : vector<16x32xf32>
    %cst_67 = arith.constant dense<0.000000e+00> : vector<16xf32>
    %167 = vector.multi_reduction <add>, %166, %cst_67 [1] : vector<16x32xf32> to vector<16xf32>
    %168 = vector.shape_cast %167 : vector<16xf32> to vector<16x1xf32>
    %cst_68 = arith.constant 3.200000e+01 : f32
    %169 = vector.broadcast %cst_68 : f32 to vector<16x1xf32>
    %170 = arith.divf %168, %169 : vector<16x1xf32>
    %171 = vector.broadcast %163 : vector<16x1xf32> to vector<16x32xf32>
    %172 = arith.subf %155, %171 : vector<16x32xf32>
    %cst_69 = arith.constant 9.99999996E-13 : f32
    %173 = vector.broadcast %cst_69 : f32 to vector<16x1xf32>
    %174 = arith.addf %170, %173 : vector<16x1xf32>
    %175 = math.rsqrt %174 : vector<16x1xf32>
    %176 = vector.broadcast %175 : vector<16x1xf32> to vector<16x32xf32>
    %177 = arith.mulf %172, %176 : vector<16x32xf32>
    %178 = vector.broadcast %157 : vector<1x32xf32> to vector<16x32xf32>
    %179 = arith.mulf %177, %178 : vector<16x32xf32>
    %180 = vector.broadcast %159 : vector<1x32xf32> to vector<16x32xf32>
    %181 = arith.addf %179, %180 : vector<16x32xf32>
    %182 = arith.truncf %181 : vector<16x32xf32> to vector<16x32xbf16>
    %c1 = arith.constant 1 : index
    %c0_70 = arith.constant 0 : index
    %c0_71 = arith.constant 0 : index
    %183 = vector.load %arg4[%c1, %c0_70, %c0_71] : memref<2x32x96xbf16, #tpu.memory_space<vmem>>, vector<1x32x96xbf16>
    %184 = vector.shape_cast %183 : vector<1x32x96xbf16> to vector<32x96xbf16>
    %cst_72 = arith.constant dense<0.000000e+00> : vector<16x96xf32>
    %185 = tpu.matmul %182, %184, %cst_72 {dimension_numbers = #tpu.dot_dimension_numbers<[1], [0], [0], [1], [0, 0, 1, 1], [], []>} : vector<16x32xbf16>, vector<32x96xbf16>, vector<16x96xf32> -> vector<16x96xf32>
    %c1_73 = arith.constant 1 : index
    %c0_74 = arith.constant 0 : index
    %c0_75 = arith.constant 0 : index
    %186 = vector.load %arg5[%c1_73, %c0_74, %c0_75] : memref<2x1x96xf32, #tpu.memory_space<vmem>>, vector<1x1x96xf32>
    %187 = vector.shape_cast %186 : vector<1x1x96xf32> to vector<1x96xf32>
    %188 = vector.broadcast %187 : vector<1x96xf32> to vector<16x96xf32>
    %189 = arith.addf %185, %188 : vector<16x96xf32>
    %190 = vector.extract_strided_slice %189 {offsets = [0, 0], sizes = [16, 32], strides = [1, 1]} : vector<16x96xf32> to vector<16x32xf32>
    %191 = vector.extract_strided_slice %190 {offsets = [0, 0], sizes = [16, 8], strides = [1, 1]} : vector<16x32xf32> to vector<16x8xf32>
    %192 = vector.shape_cast %191 : vector<16x8xf32> to vector<2x8x8xf32>
    %193 = vector.extract_strided_slice %190 {offsets = [0, 8], sizes = [16, 8], strides = [1, 1]} : vector<16x32xf32> to vector<16x8xf32>
    %194 = vector.shape_cast %193 : vector<16x8xf32> to vector<2x8x8xf32>
    %195 = vector.extract_strided_slice %190 {offsets = [0, 16], sizes = [16, 8], strides = [1, 1]} : vector<16x32xf32> to vector<16x8xf32>
    %196 = vector.shape_cast %195 : vector<16x8xf32> to vector<2x8x8xf32>
    %197 = vector.extract_strided_slice %190 {offsets = [0, 24], sizes = [16, 8], strides = [1, 1]} : vector<16x32xf32> to vector<16x8xf32>
    %198 = vector.shape_cast %197 : vector<16x8xf32> to vector<2x8x8xf32>
    %199 = tpu.concatenate %192, %194, %196, %198 in 0 : vector<2x8x8xf32>, vector<2x8x8xf32>, vector<2x8x8xf32>, vector<2x8x8xf32> -> vector<8x8x8xf32>
    %200 = vector.extract_strided_slice %189 {offsets = [0, 32], sizes = [16, 32], strides = [1, 1]} : vector<16x96xf32> to vector<16x32xf32>
    %201 = vector.extract_strided_slice %200 {offsets = [0, 0], sizes = [16, 8], strides = [1, 1]} : vector<16x32xf32> to vector<16x8xf32>
    %202 = vector.shape_cast %201 : vector<16x8xf32> to vector<2x8x8xf32>
    %203 = vector.extract_strided_slice %200 {offsets = [0, 8], sizes = [16, 8], strides = [1, 1]} : vector<16x32xf32> to vector<16x8xf32>
    %204 = vector.shape_cast %203 : vector<16x8xf32> to vector<2x8x8xf32>
    %205 = vector.extract_strided_slice %200 {offsets = [0, 16], sizes = [16, 8], strides = [1, 1]} : vector<16x32xf32> to vector<16x8xf32>
    %206 = vector.shape_cast %205 : vector<16x8xf32> to vector<2x8x8xf32>
    %207 = vector.extract_strided_slice %200 {offsets = [0, 24], sizes = [16, 8], strides = [1, 1]} : vector<16x32xf32> to vector<16x8xf32>
    %208 = vector.shape_cast %207 : vector<16x8xf32> to vector<2x8x8xf32>
    %209 = tpu.concatenate %202, %204, %206, %208 in 0 : vector<2x8x8xf32>, vector<2x8x8xf32>, vector<2x8x8xf32>, vector<2x8x8xf32> -> vector<8x8x8xf32>
    %210 = vector.extract_strided_slice %189 {offsets = [0, 64], sizes = [16, 32], strides = [1, 1]} : vector<16x96xf32> to vector<16x32xf32>
    %211 = vector.extract_strided_slice %210 {offsets = [0, 0], sizes = [16, 8], strides = [1, 1]} : vector<16x32xf32> to vector<16x8xf32>
    %212 = vector.shape_cast %211 : vector<16x8xf32> to vector<2x8x8xf32>
    %213 = vector.extract_strided_slice %210 {offsets = [0, 8], sizes = [16, 8], strides = [1, 1]} : vector<16x32xf32> to vector<16x8xf32>
    %214 = vector.shape_cast %213 : vector<16x8xf32> to vector<2x8x8xf32>
    %215 = vector.extract_strided_slice %210 {offsets = [0, 16], sizes = [16, 8], strides = [1, 1]} : vector<16x32xf32> to vector<16x8xf32>
    %216 = vector.shape_cast %215 : vector<16x8xf32> to vector<2x8x8xf32>
    %217 = vector.extract_strided_slice %210 {offsets = [0, 24], sizes = [16, 8], strides = [1, 1]} : vector<16x32xf32> to vector<16x8xf32>
    %218 = vector.shape_cast %217 : vector<16x8xf32> to vector<2x8x8xf32>
    %219 = tpu.concatenate %212, %214, %216, %218 in 0 : vector<2x8x8xf32>, vector<2x8x8xf32>, vector<2x8x8xf32>, vector<2x8x8xf32> -> vector<8x8x8xf32>
    %220 = arith.truncf %199 : vector<8x8x8xf32> to vector<8x8x8xbf16>
    %221 = arith.truncf %209 : vector<8x8x8xf32> to vector<8x8x8xbf16>
    "tpu.trace_start"() <{level = 10 : i32, message = "bqd,bkd->bqk"}> : () -> ()
    %cst_76 = arith.constant dense<0.000000e+00> : vector<8x8x8xf32>
    %222 = tpu.matmul %220, %221, %cst_76 {dimension_numbers = #tpu.dot_dimension_numbers<[2], [2], [1], [1], [0, 0, 0, 1, 1, 1], [0], [0]>} : vector<8x8x8xbf16>, vector<8x8x8xbf16>, vector<8x8x8xf32> -> vector<8x8x8xf32>
    "tpu.trace_stop"() : () -> ()
    %223 = vector.broadcast %26 : vector<8x1x8xf32> to vector<8x8x8xf32>
    %224 = arith.addf %222, %223 : vector<8x8x8xf32>
    %cst_77 = arith.constant dense<0xFF800000> : vector<8x8xf32>
    %225 = vector.multi_reduction <maximumf>, %224, %cst_77 [2] : vector<8x8x8xf32> to vector<8x8xf32>
    %226 = vector.shape_cast %225 : vector<8x8xf32> to vector<8x8x1xf32>
    %227 = vector.broadcast %226 : vector<8x8x1xf32> to vector<8x8x8xf32>
    %228 = arith.subf %224, %227 : vector<8x8x8xf32>
    %229 = math.exp %228 : vector<8x8x8xf32>
    %cst_78 = arith.constant dense<0.000000e+00> : vector<8x8xf32>
    %230 = vector.multi_reduction <add>, %229, %cst_78 [2] : vector<8x8x8xf32> to vector<8x8xf32>
    %231 = vector.shape_cast %230 : vector<8x8xf32> to vector<8x8x1xf32>
    %232 = vector.broadcast %231 : vector<8x8x1xf32> to vector<8x8x8xf32>
    %233 = arith.divf %229, %232 : vector<8x8x8xf32>
    %234 = arith.truncf %233 : vector<8x8x8xf32> to vector<8x8x8xbf16>
    %235 = arith.truncf %219 : vector<8x8x8xf32> to vector<8x8x8xbf16>
    "tpu.trace_start"() <{level = 10 : i32, message = "bqk,bkd->bqd"}> : () -> ()
    %cst_79 = arith.constant dense<0.000000e+00> : vector<8x8x8xf32>
    %236 = tpu.matmul %234, %235, %cst_79 {dimension_numbers = #tpu.dot_dimension_numbers<[2], [1], [1], [2], [0, 0, 0, 1, 1, 2], [0], [0]>} : vector<8x8x8xbf16>, vector<8x8x8xbf16>, vector<8x8x8xf32> -> vector<8x8x8xf32>
    "tpu.trace_stop"() : () -> ()
    %237 = vector.extract_strided_slice %236 {offsets = [0, 0, 0], sizes = [2, 8, 8], strides = [1, 1, 1]} : vector<8x8x8xf32> to vector<2x8x8xf32>
    %238 = vector.shape_cast %237 : vector<2x8x8xf32> to vector<16x8xf32>
    %239 = vector.extract_strided_slice %236 {offsets = [2, 0, 0], sizes = [2, 8, 8], strides = [1, 1, 1]} : vector<8x8x8xf32> to vector<2x8x8xf32>
    %240 = vector.shape_cast %239 : vector<2x8x8xf32> to vector<16x8xf32>
    %241 = vector.extract_strided_slice %236 {offsets = [4, 0, 0], sizes = [2, 8, 8], strides = [1, 1, 1]} : vector<8x8x8xf32> to vector<2x8x8xf32>
    %242 = vector.shape_cast %241 : vector<2x8x8xf32> to vector<16x8xf32>
    %243 = vector.extract_strided_slice %236 {offsets = [6, 0, 0], sizes = [2, 8, 8], strides = [1, 1, 1]} : vector<8x8x8xf32> to vector<2x8x8xf32>
    %244 = vector.shape_cast %243 : vector<2x8x8xf32> to vector<16x8xf32>
    %245 = tpu.concatenate %238, %240, %242, %244 in 1 : vector<16x8xf32>, vector<16x8xf32>, vector<16x8xf32>, vector<16x8xf32> -> vector<16x32xf32>
    %246 = arith.truncf %245 : vector<16x32xf32> to vector<16x32xbf16>
    %c1_80 = arith.constant 1 : index
    %c0_81 = arith.constant 0 : index
    %c0_82 = arith.constant 0 : index
    %247 = vector.load %arg6[%c1_80, %c0_81, %c0_82] : memref<2x32x32xbf16, #tpu.memory_space<vmem>>, vector<1x32x32xbf16>
    %248 = vector.shape_cast %247 : vector<1x32x32xbf16> to vector<32x32xbf16>
    %cst_83 = arith.constant dense<0.000000e+00> : vector<16x32xf32>
    %249 = tpu.matmul %246, %248, %cst_83 {dimension_numbers = #tpu.dot_dimension_numbers<[1], [0], [0], [1], [0, 0, 1, 1], [], []>} : vector<16x32xbf16>, vector<32x32xbf16>, vector<16x32xf32> -> vector<16x32xf32>
    %c1_84 = arith.constant 1 : index
    %c0_85 = arith.constant 0 : index
    %c0_86 = arith.constant 0 : index
    %250 = vector.load %arg7[%c1_84, %c0_85, %c0_86] : memref<2x1x32xf32, #tpu.memory_space<vmem>>, vector<1x1x32xf32>
    %251 = vector.shape_cast %250 : vector<1x1x32xf32> to vector<1x32xf32>
    %252 = vector.broadcast %251 : vector<1x32xf32> to vector<16x32xf32>
    %253 = arith.addf %249, %252 : vector<16x32xf32>
    %254 = arith.addf %181, %253 : vector<16x32xf32>
    %c1_87 = arith.constant 1 : index
    %c0_88 = arith.constant 0 : index
    %c0_89 = arith.constant 0 : index
    %255 = vector.load %arg8[%c1_87, %c0_88, %c0_89] : memref<2x1x32xf32, #tpu.memory_space<vmem>>, vector<1x1x32xf32>
    %256 = vector.shape_cast %255 : vector<1x1x32xf32> to vector<1x32xf32>
    %c1_90 = arith.constant 1 : index
    %c0_91 = arith.constant 0 : index
    %c0_92 = arith.constant 0 : index
    %257 = vector.load %arg9[%c1_90, %c0_91, %c0_92] : memref<2x1x32xf32, #tpu.memory_space<vmem>>, vector<1x1x32xf32>
    %258 = vector.shape_cast %257 : vector<1x1x32xf32> to vector<1x32xf32>
    %cst_93 = arith.constant dense<0.000000e+00> : vector<16xf32>
    %259 = vector.multi_reduction <add>, %254, %cst_93 [1] : vector<16x32xf32> to vector<16xf32>
    %260 = vector.shape_cast %259 : vector<16xf32> to vector<16x1xf32>
    %cst_94 = arith.constant 3.200000e+01 : f32
    %261 = vector.broadcast %cst_94 : f32 to vector<16x1xf32>
    %262 = arith.divf %260, %261 : vector<16x1xf32>
    %263 = vector.broadcast %262 : vector<16x1xf32> to vector<16x32xf32>
    %264 = arith.subf %254, %263 : vector<16x32xf32>
    %265 = arith.mulf %264, %264 : vector<16x32xf32>
    %cst_95 = arith.constant dense<0.000000e+00> : vector<16xf32>
    %266 = vector.multi_reduction <add>, %265, %cst_95 [1] : vector<16x32xf32> to vector<16xf32>
    %267 = vector.shape_cast %266 : vector<16xf32> to vector<16x1xf32>
    %cst_96 = arith.constant 3.200000e+01 : f32
    %268 = vector.broadcast %cst_96 : f32 to vector<16x1xf32>
    %269 = arith.divf %267, %268 : vector<16x1xf32>
    %270 = vector.broadcast %262 : vector<16x1xf32> to vector<16x32xf32>
    %271 = arith.subf %254, %270 : vector<16x32xf32>
    %cst_97 = arith.constant 9.99999996E-13 : f32
    %272 = vector.broadcast %cst_97 : f32 to vector<16x1xf32>
    %273 = arith.addf %269, %272 : vector<16x1xf32>
    %274 = math.rsqrt %273 : vector<16x1xf32>
    %275 = vector.broadcast %274 : vector<16x1xf32> to vector<16x32xf32>
    %276 = arith.mulf %271, %275 : vector<16x32xf32>
    %277 = vector.broadcast %256 : vector<1x32xf32> to vector<16x32xf32>
    %278 = arith.mulf %276, %277 : vector<16x32xf32>
    %279 = vector.broadcast %258 : vector<1x32xf32> to vector<16x32xf32>
    %280 = arith.addf %278, %279 : vector<16x32xf32>
    %281 = arith.truncf %280 : vector<16x32xf32> to vector<16x32xbf16>
    %c1_98 = arith.constant 1 : index
    %c0_99 = arith.constant 0 : index
    %c0_100 = arith.constant 0 : index
    %282 = vector.load %arg10[%c1_98, %c0_99, %c0_100] : memref<2x32x64xbf16, #tpu.memory_space<vmem>>, vector<1x32x64xbf16>
    %283 = vector.shape_cast %282 : vector<1x32x64xbf16> to vector<32x64xbf16>
    %cst_101 = arith.constant dense<0.000000e+00> : vector<16x64xf32>
    %284 = tpu.matmul %281, %283, %cst_101 {dimension_numbers = #tpu.dot_dimension_numbers<[1], [0], [0], [1], [0, 0, 1, 1], [], []>} : vector<16x32xbf16>, vector<32x64xbf16>, vector<16x64xf32> -> vector<16x64xf32>
    %c1_102 = arith.constant 1 : index
    %c0_103 = arith.constant 0 : index
    %c0_104 = arith.constant 0 : index
    %285 = vector.load %arg11[%c1_102, %c0_103, %c0_104] : memref<2x1x64xf32, #tpu.memory_space<vmem>>, vector<1x1x64xf32>
    %286 = vector.shape_cast %285 : vector<1x1x64xf32> to vector<1x64xf32>
    %287 = vector.broadcast %286 : vector<1x64xf32> to vector<16x64xf32>
    %288 = arith.addf %284, %287 : vector<16x64xf32>
    %289 = arith.mulf %288, %288 : vector<16x64xf32>
    %290 = arith.mulf %288, %289 : vector<16x64xf32>
    %cst_105 = arith.constant 4.471500e-02 : f32
    %291 = vector.broadcast %cst_105 : f32 to vector<16x64xf32>
    %292 = arith.mulf %291, %290 : vector<16x64xf32>
    %293 = arith.addf %288, %292 : vector<16x64xf32>
    %cst_106 = arith.constant 0.797884583 : f32
    %294 = vector.broadcast %cst_106 : f32 to vector<16x64xf32>
    %295 = arith.mulf %294, %293 : vector<16x64xf32>
    %296 = math.tanh %295 : vector<16x64xf32>
    %cst_107 = arith.constant 1.000000e+00 : f32
    %297 = vector.broadcast %cst_107 : f32 to vector<16x64xf32>
    %298 = arith.addf %297, %296 : vector<16x64xf32>
    %cst_108 = arith.constant 5.000000e-01 : f32
    %299 = vector.broadcast %cst_108 : f32 to vector<16x64xf32>
    %300 = arith.mulf %299, %298 : vector<16x64xf32>
    %301 = arith.mulf %288, %300 : vector<16x64xf32>
    %302 = arith.truncf %301 : vector<16x64xf32> to vector<16x64xbf16>
    %c1_109 = arith.constant 1 : index
    %c0_110 = arith.constant 0 : index
    %c0_111 = arith.constant 0 : index
    %303 = vector.load %arg12[%c1_109, %c0_110, %c0_111] : memref<2x64x32xbf16, #tpu.memory_space<vmem>>, vector<1x64x32xbf16>
    %304 = vector.shape_cast %303 : vector<1x64x32xbf16> to vector<64x32xbf16>
    %cst_112 = arith.constant dense<0.000000e+00> : vector<16x32xf32>
    %305 = tpu.matmul %302, %304, %cst_112 {dimension_numbers = #tpu.dot_dimension_numbers<[1], [0], [0], [1], [0, 0, 1, 1], [], []>} : vector<16x64xbf16>, vector<64x32xbf16>, vector<16x32xf32> -> vector<16x32xf32>
    %c1_113 = arith.constant 1 : index
    %c0_114 = arith.constant 0 : index
    %c0_115 = arith.constant 0 : index
    %306 = vector.load %arg13[%c1_113, %c0_114, %c0_115] : memref<2x1x32xf32, #tpu.memory_space<vmem>>, vector<1x1x32xf32>
    %307 = vector.shape_cast %306 : vector<1x1x32xf32> to vector<1x32xf32>
    %308 = vector.broadcast %307 : vector<1x32xf32> to vector<16x32xf32>
    %309 = arith.addf %305, %308 : vector<16x32xf32>
    %310 = arith.addf %280, %309 : vector<16x32xf32>
    %c1_116 = arith.constant 1 : index
    %c0_117 = arith.constant 0 : index
    %c0_118 = arith.constant 0 : index
    %311 = vector.load %arg14[%c1_116, %c0_117, %c0_118] : memref<2x1x32xf32, #tpu.memory_space<vmem>>, vector<1x1x32xf32>
    %312 = vector.shape_cast %311 : vector<1x1x32xf32> to vector<1x32xf32>
    %c1_119 = arith.constant 1 : index
    %c0_120 = arith.constant 0 : index
    %c0_121 = arith.constant 0 : index
    %313 = vector.load %arg15[%c1_119, %c0_120, %c0_121] : memref<2x1x32xf32, #tpu.memory_space<vmem>>, vector<1x1x32xf32>
    %314 = vector.shape_cast %313 : vector<1x1x32xf32> to vector<1x32xf32>
    %cst_122 = arith.constant dense<0.000000e+00> : vector<16xf32>
    %315 = vector.multi_reduction <add>, %310, %cst_122 [1] : vector<16x32xf32> to vector<16xf32>
    %316 = vector.shape_cast %315 : vector<16xf32> to vector<16x1xf32>
    %cst_123 = arith.constant 3.200000e+01 : f32
    %317 = vector.broadcast %cst_123 : f32 to vector<16x1xf32>
    %318 = arith.divf %316, %317 : vector<16x1xf32>
    %319 = vector.broadcast %318 : vector<16x1xf32> to vector<16x32xf32>
    %320 = arith.subf %310, %319 : vector<16x32xf32>
    %321 = arith.mulf %320, %320 : vector<16x32xf32>
    %cst_124 = arith.constant dense<0.000000e+00> : vector<16xf32>
    %322 = vector.multi_reduction <add>, %321, %cst_124 [1] : vector<16x32xf32> to vector<16xf32>
    %323 = vector.shape_cast %322 : vector<16xf32> to vector<16x1xf32>
    %cst_125 = arith.constant 3.200000e+01 : f32
    %324 = vector.broadcast %cst_125 : f32 to vector<16x1xf32>
    %325 = arith.divf %323, %324 : vector<16x1xf32>
    %326 = vector.broadcast %318 : vector<16x1xf32> to vector<16x32xf32>
    %327 = arith.subf %310, %326 : vector<16x32xf32>
    %cst_126 = arith.constant 9.99999996E-13 : f32
    %328 = vector.broadcast %cst_126 : f32 to vector<16x1xf32>
    %329 = arith.addf %325, %328 : vector<16x1xf32>
    %330 = math.rsqrt %329 : vector<16x1xf32>
    %331 = vector.broadcast %330 : vector<16x1xf32> to vector<16x32xf32>
    %332 = arith.mulf %327, %331 : vector<16x32xf32>
    %333 = vector.broadcast %312 : vector<1x32xf32> to vector<16x32xf32>
    %334 = arith.mulf %332, %333 : vector<16x32xf32>
    %335 = vector.broadcast %314 : vector<1x32xf32> to vector<16x32xf32>
    %336 = arith.addf %334, %335 : vector<16x32xf32>
    %337 = vector.shape_cast %336 : vector<16x32xf32> to vector<2x8x32xf32>
    %cst_127 = arith.constant dense<0.000000e+00> : vector<2x32xf32>
    %338 = vector.multi_reduction <add>, %337, %cst_127 [1] : vector<2x8x32xf32> to vector<2x32xf32>
    %cst_128 = arith.constant 8.000000e+00 : f32
    %339 = vector.broadcast %cst_128 : f32 to vector<2x32xf32>
    %340 = arith.divf %338, %339 : vector<2x32xf32>
    %c0_129 = arith.constant 0 : index
    %c0_130 = arith.constant 0 : index
    %341 = vector.load %arg16[%c0_129, %c0_130] : memref<2x32xf32, #tpu.memory_space<vmem>>, vector<2x32xf32>
    tpu.vector_store %arg16[%c0_129, %c0_130], %340 {strides = array<i32>} : memref<2x32xf32, #tpu.memory_space<vmem>>, vector<2x32xf32>,
    return
  }
}

</mosaic_0001>

<bundles_post_ra>
// kernel: mul.0
= control target key start
LH: loop header
LB: loop body
LE: loop exit
PB: predicated region body
PF: predicated region fallthrough
CT: control target
= control target key end

     0   :  { %s56_s0 = inlined_call_operand.vmem [shape: f32[2,1,8], index: 0, kind: input, shape index: {}]   ;;  %s57_s1 = inlined_call_operand.vmem [shape: f32[2,1,8], index: 1, kind: input, shape index: {}]   ;;  %s58_s2 = inlined_call_operand.vmem [shape: f32[2,1,8], index: 2, kind: output, shape index: {}]  }
   0x1   :  { %v3_v0 = vld [vmem:[%s56_s0] sm:$0x1]  ;;  %v20_v2 = vld [vmem:[%s56_s0 + $0x1] sm:$0x1] }
   0x2   :  { %v4_v1 = vld [vmem:[%s57_s1] sm:$0x1]  ;;  %v21_v4 = vld [vmem:[%s57_s1 + $0x1] sm:$0x1] }
   0x3   :  { %v7_v3 = vmul.f32 %v4_v1, %v3_v0  ;;  %v16_v5 = vmul.f32 %v21_v4, %v20_v2 }
   0x5   :  { %9 = vst [vmem:[%s58_s2] sm:$0x1] %v7_v3  ;;  %22 = vst [vmem:[%s58_s2 + $0x1] sm:$0x1] %v16_v5 }

// kernel: bert_text_forward.1
= control target key start
LH: loop header
LB: loop body
LE: loop exit
PB: predicated region body
PF: predicated region fallthrough
CT: control target
= control target key end

     0   :  { %s4224_s0 = inlined_call_operand.vmem [shape: f32[16,32], index: 0, kind: input, shape index: {}]   ;;  %s4225_s1 = inlined_call_operand.vmem [shape: f32[2,1,8], index: 1, kind: input, shape index: {}]   ;;  %s4226_s2 = inlined_call_operand.vmem [shape: f32[1,32], index: 2, kind: input, shape index: {}]   ;;  %s4227_s3 = inlined_call_operand.vmem [shape: f32[1,32], index: 3, kind: input, shape index: {}]   ;;  %s4228_s4 = inlined_call_operand.vmem [shape: bf16[2,32,96], index: 4, kind: input, shape index: {}]   ;;  %s4229_s5 = inlined_call_operand.vmem [shape: f32[2,1,96], index: 5, kind: input, shape index: {}]   ;;  %s4230_s6 = inlined_call_operand.vmem [shape: bf16[2,32,32], index: 6, kind: input, shape index: {}]   ;;  %s4231_s7 = inlined_call_operand.vmem [shape: f32[2,1,32], index: 7, kind: input, shape index: {}]   ;;  %s4232_s8 = inlined_call_operand.vmem [shape: f32[2,1,32], index: 8, kind: input, shape index: {}]   ;;  %s4233_s9 = inlined_call_operand.vmem [shape: f32[2,1,32], index: 9, kind: input, shape index: {}]   ;;  %s4234_s10 = inlined_call_operand.vmem [shape: bf16[2,32,64], index: 10, kind: input, shape index: {}]   ;;  %s4235_s11 = inlined_call_operand.vmem [shape: f32[2,1,64], index: 11, kind: input, shape index: {}]   ;;  %s4236_s12 = inlined_call_operand.vmem [shape: bf16[2,64,32], index: 12, kind: input, shape index: {}]   ;;  %s4237_s13 = inlined_call_operand.vmem [shape: f32[2,1,32], index: 13, kind: input, shape index: {}]   ;;  %s4238_s14 = inlined_call_operand.vmem [shape: f32[2,1,32], index: 14, kind: input, shape index: {}]   ;;  %s4239_s15 = inlined_call_operand.vmem [shape: f32[2,1,32], index: 15, kind: input, shape index: {}]   ;;  %s4240_s16 = inlined_call_operand.hbm [shape: f32[2,32], index: 16, kind: output, shape index: {}]  }
   0x1   :  { %4242 = sst [smem:[#allocation5_spill]] %s4224_s0 }
   0x2   :  { %s4243_s23 = sld [smem:[#allocation5_spill]]  ;;  %vm59_vm0 = vcmask 261120  }
   0x8   :  { %v55_v0 = vld [vmem:[%s4243_s23] sm:$0xff]  ;;  %v56_v1 = vld [vmem:[%s4243_s23 + $0x8] sm:$0xff] }
   0x9   :  { %v60_v2 = vsel %vm59_vm0, %v55_v0, 0.0  ;;  %v63_v3 = vsel %vm59_vm0, %v56_v1, 0.0 }
   0xa   :  { %61 = vadd.xlane.f32.xlu0 %v60_v2 }
   0xe   :  { %64 = vadd.xlane.f32.xlu0 %v63_v3 }
   0xf   :  { %21 = vsyncpa [#allocation3], 0  ;;  %v3363_v14 = vld [vmem:[%s4228_s4] sm:$0xff]   ;;  %v3501_v15 = vmov 0.0   ;;  %v3364_v16 = vld [vmem:[%s4228_s4 + $0x8] sm:$0xff]   ;;  %vm3502_vm1 = vmmov 0  }
  0x10   :  { %3028 = vmatprep.subr.bf16.mxu1 %v3501_v15  ;;  %3042 = vmatprep.subr.bf16.mxu0 %v3501_v15  ;;  %v2828_v25 = vld [vmem:[%s4226_s2] ss:$0 sm:$0xff]  ;;  %s3504_s20 = smov 120   ;;  %s3505_s21 = smov 104   ;;  %vm216_vm2 = vcmask 64512   ;;  %vm707_vm3 = vcmask 1043456  }
  0x11   :  { %3029 = vmatpush3.bf16.msra.mxu1 %v3363_v14  ;;  %3032 = vmatprep.mubr.msk.bf16.mxu1 %vm3502_vm1, %v3501_v15  ;;  %v2829_v29 = vld [vmem:[%s4227_s3] ss:$0 sm:$0xff]  ;;  %s3503_s3 = smov 112   ;;  %s3506_s22 = smov 96   ;;  %vm1113_vm4 = vcmask 130048   ;;  %vm1116_vm5 = vcmask 195584  }
  0x12   :  { %3030 = vmatprep.subr.bf16.mxu1 %v3501_v15  ;;  %3044 = vmatprep.mubr.msk.bf16.mxu0 %vm3502_vm1, %v3501_v15  ;;  %v2830_v34 = vld [vmem:[%s4229_s5] ss:$0 sm:$0xff]  ;;  %s3507_s23 = smov 64   ;;  %s3508_s28 = smov 8   ;;  %vm1359_vm6 = vcmask 523264   ;;  %vm2809_vm7 = vcmask 1041409  }
  0x13   :  { %s3509_s18 = smov 16   ;;  %s3510_s2 = smov 24   ;;  %vm2812_vm8 = vcmask 254976  }
  0x15   :  { %3031 = vmatpush3.bf16.msra.mxu1 %v3364_v16 }
  0x16   :  { %3036 = vmatprep.subr.bf16.mxu1 %v3501_v15 }
  0x97   :  { %v62_v4 = vpop.xlane.xlu0 %61 }
  0x98   :  { %v67_v5 = vmul.f32 0.03125, %v62_v4 }
  0x9a   :  { %v69_v6 = vsub.f32 %v55_v0, %v67_v5 }
  0x9b   :  { %v65_v7 = vpop.xlane.xlu0 %64 }
  0x9c   :  { %v68_v8 = vmul.f32 0.03125, %v65_v7  ;;  %v71_v9 = vmul.f32 %v69_v6, %v69_v6 }
  0x9e   :  { %v70_v10 = vsub.f32 %v56_v1, %v68_v8  ;;  %v73_v11 = vsel %vm59_vm0, %v71_v9, 0.0 }
  0x9f   :  { %74 = vadd.xlane.f32.xlu1 %v73_v11 }
  0xa0   :  { %v72_v12 = vmul.f32 %v70_v10, %v70_v10 }
  0xa2   :  { %v76_v13 = vsel %vm59_vm0, %v72_v12, 0.0 }
  0xa3   :  { %77 = vadd.xlane.f32.xlu1 %v76_v13  ;;  %v3724_v13 = vld [vmem:[%s4225_s1 + $0x1] ss:$0 sm:$0xff] }
 0x12c   :  { %v75_v17 = vpop.xlane.xlu1 %74 }
 0x12d   :  { %v79_v18 = vmul.f32 0.03125, %v75_v17 }
 0x12f   :  { %v81_v19 = vadd.f32 1e-12, %v79_v18  ;;  %v2834_v18 = vld [vmem:[%s4225_s1] ss:$0 sm:$0xff] }
 0x130   :  { %v78_v20 = vpop.xlane.xlu1 %77 }
 0x131   :  { %3383 = vrsqrt.f32 %v81_v19  ;;  %v80_v21 = vmul.f32 0.03125, %v78_v20 }
 0x133   :  { %v82_v22 = vadd.f32 1e-12, %v80_v21 }
 0x135   :  { %3385 = vrsqrt.f32 %v82_v22 }
 0x13b   :  { %v3384_v23 = vpop.eup %3383 }
 0x13c   :  { %v85_v24 = vmul.f32 %v3384_v23, %v69_v6 }
 0x13e   :  { %v93_v28 = vmul.f32 %v2828_v25, %v85_v24 }
 0x13f   :  { %v3386_v26 = vpop.eup %3385 }
 0x140   :  { %v86_v27 = vmul.f32 %v3386_v26, %v70_v10  ;;  %v3627_v31 = vadd.f32 %v2829_v29, %v93_v28 }
 0x142   :  { %v94_v30 = vmul.f32 %v2828_v25, %v86_v27 }
 0x144   :  { %v3629_v32 = vadd.f32 %v2829_v29, %v94_v30 }
 0x146   :  { %v105_v33 = vpack.c.bf16 %v3629_v32, %v3627_v31 }
 0x148   :  { %3033 = vmatmul.mubr.msk.bf16.vlgmr.msra.gmra.mrb[0].mxu1 %vm59_vm0, %v105_v33 }
 0x149   :  { %3038 = vmatprep.mubr.msk.bf16.mxu1 %vm3502_vm1, %v3501_v15 }
 0x21b   :  { %v166_v35 = vpop.f32.mrb[0].mxu1 }
 0x21c   :  { %v3034_v36 = vpop.f32.mrb[1].mxu1  ;;  %v167_v38 = vadd.f32 %v2830_v34, %v166_v35 }
 0x21d   :  { %v169_v37 = vpop.f32.mrb[2].mxu1 }
 0x21e   :  { %v170_v39 = vadd.f32 %v2830_v34, %v169_v37  ;;  %v3035_v40 = vpop.f32.mrb[3].mxu1  ;;  %v193_v43 = vpack.c.bf16 %v167_v38, %v167_v38 }
 0x220   :  { %v3308_v41 = vpack.i.bf16 %v170_v39, %v167_v38  ;;  %v3641_v42 = vpack.c.bf16 %v170_v39, %v170_v39 }
 0x222   :  { %3309 = vrot.lane.b32.xlu1 %v3308_v41, %s3503_s3  ;;  %3304 = vrot.lane.b32.xlu0 %v3308_v41, %s3504_s20 }
 0x226   :  { %3314 = vrot.lane.b32.xlu1 %v3308_v41, %s3505_s21  ;;  %264 = vrot.lane.b32.xlu0 %v3641_v42, %s3506_s22 }
 0x22a   :  { %214 = vrot.lane.b32.xlu1 %v193_v43, %s3506_s22 }
 0x294   :  { %v3310_v44 = vpop.permute.xlu1 %3309  ;;  %v3305_v45 = vpop.permute.xlu0 %3304 }
 0x295   :  { %v3307_v46 = vunpack.i.h.bf16 %v3305_v45  ;;  %v3306_v47 = vunpack.i.l.bf16 %v3305_v45  ;;  %v3312_v48 = vunpack.i.h.bf16 %v3310_v44  ;;  %v3311_v49 = vunpack.i.l.bf16 %v3310_v44 }
 0x297   :  { %v3647_v50 = vpack.c.bf16 %v3307_v46, %v3307_v46  ;;  %v3649_v51 = vpack.c.bf16 %v3306_v47, %v3306_v47  ;;  %v3656_v55 = vpack.c.bf16 %v3312_v48, %v3312_v48  ;;  %v3658_v56 = vpack.c.bf16 %v3311_v49, %v3311_v49 }
 0x298   :  { %v3315_v52 = vpop.permute.xlu1 %3314  ;;  %v265_v53 = vpop.permute.xlu0 %264 }
 0x299   :  { %313 = vrot.lane.b32.xlu1 %v3649_v51, %s3506_s22  ;;  %362 = vrot.lane.b32.xlu0 %v3647_v50, %s3506_s22  ;;  %v270_v54 = vsel %vm216_vm2, %v265_v53, 0  ;;  %v3317_v57 = vunpack.i.h.bf16 %v3315_v52  ;;  %v3316_v58 = vunpack.i.l.bf16 %v3315_v52 }
 0x29a   :  { %3043 = vmatpush3.bf16.xpose.msra.mxu0 %v270_v54 }
 0x29b   :  { %3054 = vmatprep.subr.bf16.mxu0 %v3501_v15  ;;  %v3666_v61 = vpack.c.bf16 %v3317_v57, %v3317_v57  ;;  %v3668_v62 = vpack.c.bf16 %v3316_v58, %v3316_v58 }
 0x29c   :  { %v215_v59 = vpop.permute.xlu1 %214 }
 0x29d   :  { %v221_v60 = vsel %vm216_vm2, %v215_v59, 0  ;;  %411 = vrot.lane.b32.xlu1 %v3658_v56, %s3506_s22  ;;  %460 = vrot.lane.b32.xlu0 %v3656_v55, %s3506_s22 }
 0x29e   :  { %3037 = vmatpush3.bf16.xpose.msra.mxu1 %v221_v60 }
 0x29f   :  { %3048 = vmatprep.subr.bf16.mxu1 %v3501_v15 }
 0x2a1   :  { %509 = vrot.lane.b32.xlu1 %v3668_v62, %s3506_s22  ;;  %558 = vrot.lane.b32.xlu0 %v3666_v61, %s3506_s22 }
 0x2a2   :  { %3045 = vmatmul.mubr.msk.bf16.vlgmr.msra.gmra.mrb[0].mxu0 %vm216_vm2, %v3641_v42 }
 0x2a3   :  { %3056 = vmatprep.mubr.msk.bf16.mxu0 %vm3502_vm1, %v3501_v15 }
 0x2a5   :  { %3039 = vmatmul.mubr.msk.bf16.vlgmr.msra.gmra.mrb[4].mxu1 %vm216_vm2, %v193_v43  ;;  %702 = vrot.lane.b32.xlu1 %v193_v43, %s3507_s23 }
 0x2a6   :  { %3050 = vmatprep.mubr.msk.bf16.mxu1 %vm3502_vm1, %v3501_v15 }
 0x30b   :  { %v314_v63 = vpop.permute.xlu1 %313  ;;  %v363_v0 = vpop.permute.xlu0 %362 }
 0x30c   :  { %v319_v1 = vsel %vm216_vm2, %v314_v63, 0  ;;  %v368_v2 = vsel %vm216_vm2, %v363_v0, 0 }
 0x30d   :  { %3049 = vmatpush3.bf16.xpose.msra.mxu1 %v319_v1  ;;  %3055 = vmatpush3.bf16.xpose.msra.mxu0 %v368_v2 }
 0x30e   :  { %3060 = vmatprep.subr.bf16.mxu1 %v3501_v15  ;;  %3066 = vmatprep.subr.bf16.mxu0 %v3501_v15 }
 0x30f   :  { %v412_v3 = vpop.permute.xlu1 %411  ;;  %v461_v4 = vpop.permute.xlu0 %460 }
 0x310   :  { %v417_v5 = vsel %vm216_vm2, %v412_v3, 0  ;;  %v466_v6 = vsel %vm216_vm2, %v461_v4, 0 }
 0x313   :  { %v510_v7 = vpop.permute.xlu1 %509  ;;  %v559_v8 = vpop.permute.xlu0 %558 }
 0x314   :  { %3051 = vmatmul.mubr.msk.bf16.vlgmr.msra.gmra.mrb[8].mxu1 %vm216_vm2, %v3649_v51  ;;  %3057 = vmatmul.mubr.msk.bf16.vlgmr.msra.gmra.mrb[4].mxu0 %vm216_vm2, %v3647_v50  ;;  %v515_v9 = vsel %vm216_vm2, %v510_v7, 0  ;;  %v564_v10 = vsel %vm216_vm2, %v559_v8, 0 }
 0x315   :  { %3061 = vmatpush3.bf16.xpose.msra.mxu1 %v417_v5  ;;  %3067 = vmatpush3.bf16.xpose.msra.mxu0 %v466_v6 }
 0x316   :  { %3062 = vmatprep.mubr.msk.bf16.mxu1 %vm3502_vm1, %v3501_v15  ;;  %3068 = vmatprep.mubr.msk.bf16.mxu0 %vm3502_vm1, %v3501_v15 }
 0x317   :  { %3072 = vmatprep.subr.bf16.mxu1 %v3501_v15  ;;  %3078 = vmatprep.subr.bf16.mxu0 %v3501_v15  ;;  %v703_v11 = vpop.permute.xlu1 %702 }
 0x318   :  { %v709_v12 = vsel %vm707_vm3, %v703_v11, 0 }
 0x31c   :  { %3063 = vmatmul.mubr.msk.bf16.vlgmr.msra.gmra.mrb[12].mxu1 %vm216_vm2, %v3658_v56  ;;  %3069 = vmatmul.mubr.msk.bf16.vlgmr.msra.gmra.mrb[8].mxu0 %vm216_vm2, %v3656_v55 }
 0x31d   :  { %3073 = vmatpush3.bf16.xpose.msra.mxu1 %v515_v9  ;;  %3079 = vmatpush3.bf16.xpose.msra.mxu0 %v564_v10 }
 0x31e   :  { %3074 = vmatprep.mubr.msk.bf16.mxu1 %vm3502_vm1, %v3501_v15  ;;  %3080 = vmatprep.mubr.msk.bf16.mxu0 %vm3502_vm1, %v3501_v15 }
 0x31f   :  { %3084 = vmatprep.subr.bf16.mxu1 %v3501_v15  ;;  %3090 = vmatprep.subr.bf16.mxu0 %v3501_v15 }
 0x324   :  { %3075 = vmatmul.mubr.msk.bf16.vlgmr.msra.gmra.mrb[16].mxu1 %vm216_vm2, %v3668_v62  ;;  %3081 = vmatmul.mubr.msk.bf16.vlgmr.msra.gmra.mrb[12].mxu0 %vm216_vm2, %v3666_v61 }
 0x325   :  { %3085 = vmatpush3.bf16.msra.mxu1 %v709_v12  ;;  %3092 = vmatprep.mubr.msk.bf16.mxu0 %vm3502_vm1, %v3501_v15 }
 0x326   :  { %3086 = vmatprep.mubr.msk.bf16.mxu1 %vm3502_vm1, %v3501_v15  ;;  %3096 = vmatprep.subr.bf16.mxu1 %v3501_v15 }
 0x375   :  { %v306_v14 = vpop.f32.mrb[0].mxu0 }
 0x376   :  { %v307_v16 = vadd.f32 %v3724_v13, %v306_v14  ;;  %v3046_v17 = vpop.f32.mrb[1].mxu0 }
 0x377   :  { %v309_v19 = vpop.f32.mrb[2].mxu0 }
 0x378   :  { %v3047_v20 = vpop.f32.mrb[3].mxu0  ;;  %v609_v21 = vsel %vm216_vm2, %v307_v16, -inf  ;;  %v257_v22 = vpop.f32.mrb[4].mxu1 }
 0x379   :  { %610 = vmax.xlane.f32.xlu0 %v609_v21  ;;  %v258_v23 = vadd.f32 %v2834_v18, %v257_v22  ;;  %v3040_v24 = vpop.f32.mrb[5].mxu1 }
 0x37a   :  { %v260_v25 = vpop.f32.mrb[6].mxu1 }
 0x37b   :  { %v3041_v26 = vpop.f32.mrb[7].mxu1  ;;  %v606_v27 = vsel %vm216_vm2, %v258_v23, -inf }
 0x37c   :  { %607 = vmax.xlane.f32.xlu1 %v606_v27 }
 0x3e7   :  { %v355_v28 = vpop.f32.mrb[8].mxu1  ;;  %v404_v29 = vpop.f32.mrb[4].mxu0 }
 0x3e8   :  { %v356_v30 = vadd.f32 %v2834_v18, %v355_v28  ;;  %v3052_v33 = vpop.f32.mrb[9].mxu1  ;;  %v3058_v34 = vpop.f32.mrb[5].mxu0  ;;  %v405_v37 = vadd.f32 %v3724_v13, %v404_v29 }
 0x3e9   :  { %v358_v35 = vpop.f32.mrb[10].mxu1  ;;  %v407_v36 = vpop.f32.mrb[6].mxu0 }
 0x3ea   :  { %v3053_v38 = vpop.f32.mrb[11].mxu1  ;;  %v3059_v39 = vpop.f32.mrb[7].mxu0  ;;  %v612_v40 = vsel %vm216_vm2, %v356_v30, -inf  ;;  %v615_v41 = vsel %vm216_vm2, %v405_v37, -inf }
 0x3eb   :  { %613 = vmax.xlane.f32.xlu0 %v612_v40 }
 0x3ef   :  { %v502_v43 = vpop.f32.mrb[8].mxu0  ;;  %616 = vmax.xlane.f32.xlu0 %v615_v41  ;;  %v453_v44 = vpop.f32.mrb[12].mxu1 }
 0x3f0   :  { %v3736_v45 = vadd.f32 %v3724_v13, %v502_v43  ;;  %v454_v46 = vadd.f32 %v2834_v18, %v453_v44  ;;  %v3064_v47 = vpop.f32.mrb[13].mxu1  ;;  %v3070_v48 = vpop.f32.mrb[9].mxu0 }
 0x3f1   :  { %v456_v49 = vpop.f32.mrb[14].mxu1  ;;  %v505_v52 = vpop.f32.mrb[10].mxu0 }
 0x3f2   :  { %v3065_v53 = vpop.f32.mrb[15].mxu1  ;;  %v3071_v54 = vpop.f32.mrb[11].mxu0  ;;  %v621_v57 = vsel %vm216_vm2, %v3736_v45, -inf  ;;  %v618_v58 = vsel %vm216_vm2, %v454_v46, -inf }
 0x3f3   :  { %622 = vmax.xlane.f32.xlu0 %v621_v57  ;;  %619 = vmax.xlane.f32.xlu1 %v618_v58 }
 0x3f7   :  { %v551_v59 = vpop.f32.mrb[16].mxu1  ;;  %v600_v60 = vpop.f32.mrb[12].mxu0 }
 0x3f8   :  { %v552_v63 = vadd.f32 %v2834_v18, %v551_v59  ;;  %v3742_v0 = vadd.f32 %v3724_v13, %v600_v60  ;;  %v3076_v1 = vpop.f32.mrb[17].mxu1  ;;  %v3082_v2 = vpop.f32.mrb[13].mxu0 }
 0x3f9   :  { %v554_v3 = vpop.f32.mrb[18].mxu1  ;;  %v603_v4 = vpop.f32.mrb[14].mxu0 }
 0x3fa   :  { %v3077_v5 = vpop.f32.mrb[19].mxu1  ;;  %v3083_v6 = vpop.f32.mrb[15].mxu0  ;;  %v627_v7 = vsel %vm216_vm2, %v3742_v0, -inf  ;;  %v624_v8 = vsel %vm216_vm2, %v552_v63, -inf }
 0x3fb   :  { %628 = vmax.xlane.f32.xlu0 %v627_v7  ;;  %625 = vmax.xlane.f32.xlu1 %v624_v8 }
 0x406   :  { %v611_v9 = vpop.xlane.xlu0 %610 }
 0x407   :  { %v631_v10 = vsub.f32 %v307_v16, %v611_v9 }
 0x409   :  { %v608_v11 = vpop.xlane.xlu1 %607  ;;  %v640_v12 = vmul.f32 1.442695, %v631_v10 }
 0x40a   :  { %v630_v14 = vsub.f32 %v258_v23, %v608_v11 }
 0x40b   :  { %3387 = vpow2.f32 %v640_v12 }
 0x40c   :  { %799 = vrot.lane.b32.xlu1 %v3649_v51, %s3507_s23  ;;  %v638_v17 = vmul.f32 1.442695, %v630_v14 }
 0x40e   :  { %3389 = vpow2.f32 %v638_v17 }
 0x410   :  { %847 = vrot.lane.b32.xlu1 %v3647_v50, %s3507_s23 }
 0x411   :  { %751 = vrot.lane.b32.xlu0 %v3641_v42, %s3507_s23 }
 0x415   :  { %v3388_v18 = vpop.eup %3387 }
 0x416   :  { %v657_v19 = vsel %vm216_vm2, %v3388_v18, 0.0 }
 0x418   :  { %v3754_v20 = vpop.eup %3389 }
 0x419   :  { %v654_v50 = vsel %vm216_vm2, %v3754_v20, 0.0 }
 0x430   :  { %658 = vadd.xlane.f32.xlu0 %v657_v19 }
 0x434   :  { %655 = vadd.xlane.f32.xlu1 %v654_v50 }
 0x445   :  { %895 = vrot.lane.b32.xlu1 %v3658_v56, %s3507_s23 }
 0x478   :  { %v614_v42 = vpop.xlane.xlu0 %613 }
 0x479   :  { %v632_v51 = vsub.f32 %v356_v30, %v614_v42 }
 0x47b   :  { %v642_v16 = vmul.f32 1.442695, %v632_v51 }
 0x47c   :  { %v617_v21 = vpop.xlane.xlu0 %616 }
 0x47d   :  { %3391 = vpow2.f32 %v642_v16  ;;  %v633_v22 = vsub.f32 %v405_v37, %v617_v21 }
 0x47f   :  { %v644_v23 = vmul.f32 1.442695, %v633_v22 }
 0x480   :  { %v620_v24 = vpop.xlane.xlu1 %619  ;;  %v623_v27 = vpop.xlane.xlu0 %622 }
 0x481   :  { %3393 = vpow2.f32 %v644_v23  ;;  %v634_v25 = vsub.f32 %v454_v46, %v620_v24  ;;  %v635_v44 = vsub.f32 %v3736_v45, %v623_v27 }
 0x483   :  { %v646_v26 = vmul.f32 1.442695, %v634_v25  ;;  %v648_v46 = vmul.f32 1.442695, %v635_v44 }
 0x485   :  { %3395 = vpow2.f32 %v646_v26 }
 0x487   :  { %v3760_v28 = vpop.eup %3391 }
 0x488   :  { %v629_v29 = vpop.xlane.xlu0 %628  ;;  %v626_v33 = vpop.xlane.xlu1 %625  ;;  %v660_v56 = vsel %vm216_vm2, %v3760_v28, 0.0 }
 0x489   :  { %v636_v34 = vsub.f32 %v552_v63, %v626_v33  ;;  %661 = vadd.xlane.f32.xlu1 %v660_v56  ;;  %v637_v47 = vsub.f32 %v3742_v0, %v629_v29 }
 0x48b   :  { %v3764_v30 = vpop.eup %3393  ;;  %v650_v35 = vmul.f32 1.442695, %v636_v34  ;;  %v652_v48 = vmul.f32 1.442695, %v637_v47 }
 0x48c   :  { %v752_v36 = vpop.permute.xlu0 %751  ;;  %v663_v37 = vsel %vm216_vm2, %v3764_v30, 0.0  ;;  %v800_v49 = vpop.permute.xlu1 %799 }
 0x48d   :  { %v757_v38 = vsel %vm707_vm3, %v752_v36, 0  ;;  %664 = vadd.xlane.f32.xlu0 %v663_v37  ;;  %3397 = vpow2.f32 %v650_v35  ;;  %v805_v3 = vsel %vm707_vm3, %v800_v49, 0 }
 0x48e   :  { %3091 = vmatpush3.bf16.msra.mxu0 %v757_v38  ;;  %3399 = vpow2.f32 %v648_v46 }
 0x48f   :  { %3102 = vmatprep.subr.bf16.mxu0 %v3501_v15  ;;  %v3770_v39 = vpop.eup %3395  ;;  %3401 = vpow2.f32 %v652_v48 }
 0x490   :  { %v666_v40 = vsel %vm216_vm2, %v3770_v39, 0.0  ;;  %v848_v52 = vpop.permute.xlu1 %847 }
 0x491   :  { %667 = vadd.xlane.f32.xlu1 %v666_v40  ;;  %v853_v0 = vsel %vm707_vm3, %v848_v52, 0 }
 0x497   :  { %v3774_v41 = vpop.eup %3397 }
 0x498   :  { %v672_v43 = vsel %vm216_vm2, %v3774_v41, 0.0  ;;  %v3784_v54 = vpop.eup %3399 }
 0x499   :  { %673 = vadd.xlane.f32.xlu1 %v672_v43  ;;  %v3788_v58 = vpop.eup %3401 }
 0x4a3   :  { %943 = vrot.lane.b32.xlu0 %v3656_v55, %s3507_s23  ;;  %v669_v55 = vsel %vm216_vm2, %v3784_v54, 0.0 }
 0x4aa   :  { %991 = vrot.lane.b32.xlu1 %v3668_v62, %s3507_s23  ;;  %v675_v62 = vsel %vm216_vm2, %v3788_v58, 0.0 }
 0x4bd   :  { %v659_v53 = vpop.xlane.xlu0 %658 }
 0x4be   :  { %3403 = vrcp.f32 %v659_v53 }
 0x4c1   :  { %v656_v57 = vpop.xlane.xlu1 %655 }
 0x4c2   :  { %3405 = vrcp.f32 %v656_v57  ;;  %670 = vadd.xlane.f32.xlu0 %v669_v55 }
 0x4c5   :  { %v896_v4 = vpop.permute.xlu1 %895 }
 0x4c6   :  { %676 = vadd.xlane.f32.xlu0 %v675_v62  ;;  %v901_v12 = vsel %vm707_vm3, %v896_v4, 0 }
 0x4c8   :  { %v3404_v45 = vpop.eup %3403 }
 0x4c9   :  { %v681_v59 = vmul.f32 %v3404_v45, %v3388_v18 }
 0x4cb   :  { %v695_v60 = vpack.c.bf16 %v681_v59, %v681_v59 }
 0x4cc   :  { %v3406_v63 = vpop.eup %3405 }
 0x4cd   :  { %v679_v1 = vmul.f32 %v3406_v63, %v3754_v20  ;;  %3093 = vmatmul.mubr.msk.bf16.vlgmr.msra.gmra.mrb[16].mxu0 %vm216_vm2, %v695_v60 }
 0x4ce   :  { %3103 = vmatpush3.bf16.msra.mxu0 %v853_v0  ;;  %3104 = vmatprep.mubr.msk.bf16.mxu0 %vm3502_vm1, %v3501_v15 }
 0x4cf   :  { %v694_v2 = vpack.c.bf16 %v679_v1, %v679_v1  ;;  %3114 = vmatprep.subr.bf16.mxu0 %v3501_v15  ;;  %v3365_v1 = vld [vmem:[%s4230_s6] sm:$0xff]  }
 0x4d1   :  { %3087 = vmatmul.mubr.msk.bf16.vlgmr.msra.gmra.mrb[20].mxu1 %vm216_vm2, %v694_v2 }
 0x4d2   :  { %3097 = vmatpush3.bf16.msra.mxu1 %v805_v3  ;;  %3098 = vmatprep.mubr.msk.bf16.mxu1 %vm3502_vm1, %v3501_v15  ;;  %v3366_v3 = vld [vmem:[%s4230_s6 + $0x8] sm:$0xff]  }
 0x4d3   :  { %3108 = vmatprep.subr.bf16.mxu1 %v3501_v15 }
 0x4dc   :  { %1039 = vrot.lane.b32.xlu0 %v3666_v61, %s3507_s23 }
 0x516   :  { %v662_v5 = vpop.xlane.xlu1 %661 }
 0x517   :  { %3407 = vrcp.f32 %v662_v5 }
 0x51a   :  { %v665_v6 = vpop.xlane.xlu0 %664 }
 0x51b   :  { %3409 = vrcp.f32 %v665_v6 }
 0x51e   :  { %v668_v7 = vpop.xlane.xlu1 %667  ;;  %v944_v17 = vpop.permute.xlu0 %943 }
 0x51f   :  { %3411 = vrcp.f32 %v668_v7  ;;  %v949_v20 = vsel %vm707_vm3, %v944_v17, 0 }
 0x521   :  { %v3408_v8 = vpop.eup %3407 }
 0x522   :  { %v683_v9 = vmul.f32 %v3408_v8, %v3760_v28 }
 0x524   :  { %v696_v10 = vpack.c.bf16 %v683_v9, %v683_v9 }
 0x525   :  { %v3410_v11 = vpop.eup %3409 }
 0x526   :  { %v685_v14 = vmul.f32 %v3410_v11, %v3764_v30  ;;  %3099 = vmatmul.mubr.msk.bf16.vlgmr.msra.gmra.mrb[24].mxu1 %vm216_vm2, %v696_v10  ;;  %v674_v61 = vpop.xlane.xlu1 %673 }
 0x527   :  { %3109 = vmatpush3.bf16.msra.mxu1 %v901_v12  ;;  %3110 = vmatprep.mubr.msk.bf16.mxu1 %vm3502_vm1, %v3501_v15  ;;  %3413 = vrcp.f32 %v674_v61 }
 0x528   :  { %v697_v18 = vpack.c.bf16 %v685_v14, %v685_v14  ;;  %3120 = vmatprep.subr.bf16.mxu1 %v3501_v15 }
 0x529   :  { %v3412_v19 = vpop.eup %3411 }
 0x52a   :  { %3105 = vmatmul.mubr.msk.bf16.vlgmr.msra.gmra.mrb[20].mxu0 %vm216_vm2, %v697_v18  ;;  %v687_v50 = vmul.f32 %v3412_v19, %v3770_v39  ;;  %v992_v42 = vpop.permute.xlu1 %991 }
 0x52b   :  { %3115 = vmatpush3.bf16.msra.mxu0 %v949_v20  ;;  %3116 = vmatprep.mubr.msk.bf16.mxu0 %vm3502_vm1, %v3501_v15  ;;  %v997_v16 = vsel %vm707_vm3, %v992_v42, 0 }
 0x52c   :  { %3126 = vmatprep.subr.bf16.mxu0 %v3501_v15  ;;  %v698_v51 = vpack.c.bf16 %v687_v50, %v687_v50 }
 0x52e   :  { %3111 = vmatmul.mubr.msk.bf16.vlgmr.msra.gmra.mrb[28].mxu1 %vm216_vm2, %v698_v51 }
 0x52f   :  { %3121 = vmatpush3.bf16.msra.mxu1 %v997_v16  ;;  %3122 = vmatprep.mubr.msk.bf16.mxu1 %vm3502_vm1, %v3501_v15 }
 0x530   :  { %3132 = vmatprep.subr.bf16.mxu1 %v3501_v15 }
 0x531   :  { %v3414_v21 = vpop.eup %3413 }
 0x532   :  { %v691_v22 = vmul.f32 %v3414_v21, %v3774_v41 }
 0x534   :  { %v700_v23 = vpack.c.bf16 %v691_v22, %v691_v22 }
 0x536   :  { %3123 = vmatmul.mubr.msk.bf16.vlgmr.msra.gmra.mrb[32].mxu1 %vm216_vm2, %v700_v23 }
 0x537   :  { %3136 = vmatprep.mubr.msk.bf16.mxu1 %vm3502_vm1, %v3501_v15  ;;  %3133 = vmatpush3.bf16.msra.mxu1 %v3365_v1 }
 0x538   :  { %3134 = vmatprep.subr.bf16.mxu1 %v3501_v15 }
 0x53b   :  { %3135 = vmatpush3.bf16.msra.mxu1 %v3366_v3 }
 0x53c   :  { %3148 = vmatprep.subr.bf16.mxu1 %v3501_v15 }
 0x54f   :  { %v671_v24 = vpop.xlane.xlu0 %670 }
 0x550   :  { %3415 = vrcp.f32 %v671_v24 }
 0x553   :  { %v677_v25 = vpop.xlane.xlu0 %676 }
 0x554   :  { %3417 = vrcp.f32 %v677_v25 }
 0x557   :  { %v1040_v28 = vpop.permute.xlu0 %1039 }
 0x558   :  { %v1045_v56 = vsel %vm707_vm3, %v1040_v28, 0 }
 0x55a   :  { %v3416_v26 = vpop.eup %3415 }
 0x55b   :  { %v689_v27 = vmul.f32 %v3416_v26, %v3784_v54 }
 0x55d   :  { %v699_v29 = vpack.c.bf16 %v689_v27, %v689_v27  ;;  %v2852_v27 = vld [vmem:[%s4231_s7] ss:$0 sm:$0xff] }
 0x55e   :  { %v3418_v33 = vpop.eup %3417 }
 0x55f   :  { %3117 = vmatmul.mubr.msk.bf16.vlgmr.msra.gmra.mrb[24].mxu0 %vm216_vm2, %v699_v29  ;;  %v693_v34 = vmul.f32 %v3418_v33, %v3788_v58 }
 0x560   :  { %3127 = vmatpush3.bf16.msra.mxu0 %v1045_v56  ;;  %3128 = vmatprep.mubr.msk.bf16.mxu0 %vm3502_vm1, %v3501_v15 }
 0x561   :  { %3140 = vmatprep.subr.bf16.mxu0 %v3501_v15  ;;  %v701_v30 = vpack.c.bf16 %v693_v34, %v693_v34 }
 0x567   :  { %3129 = vmatmul.mubr.msk.bf16.vlgmr.msra.gmra.mrb[28].mxu0 %vm216_vm2, %v701_v30 }
 0x568   :  { %3144 = vmatprep.mubr.msk.bf16.mxu0 %vm3502_vm1, %v3501_v15 }
 0x5a0   :  { %v793_v35 = vpop.f32.mrb[16].mxu0 }
 0x5a1   :  { %v3094_v36 = vpop.f32.mrb[17].mxu0 }
 0x5a2   :  { %v796_v37 = vpop.f32.mrb[18].mxu0 }
 0x5a3   :  { %v3095_v38 = vpop.f32.mrb[19].mxu0 }
 0x5a4   :  { %v745_v39 = vpop.f32.mrb[20].mxu1 }
 0x5a5   :  { %v3088_v40 = vpop.f32.mrb[21].mxu1 }
 0x5a6   :  { %v748_v41 = vpop.f32.mrb[22].mxu1 }
 0x5a7   :  { %v3089_v43 = vpop.f32.mrb[23].mxu1 }
 0x5f9   :  { %v841_v44 = vpop.f32.mrb[24].mxu1 }
 0x5fa   :  { %v3100_v46 = vpop.f32.mrb[25].mxu1 }
 0x5fb   :  { %v844_v47 = vpop.f32.mrb[26].mxu1 }
 0x5fc   :  { %v3101_v48 = vpop.f32.mrb[27].mxu1 }
 0x5fd   :  { %v889_v49 = vpop.f32.mrb[20].mxu0 }
 0x5fe   :  { %v3318_v52 = vpack.i.bf16 %v889_v49, %v841_v44  ;;  %v3106_v53 = vpop.f32.mrb[21].mxu0 }
 0x5ff   :  { %v892_v54 = vpop.f32.mrb[22].mxu0 }
 0x600   :  { %v3107_v57 = vpop.f32.mrb[23].mxu0  ;;  %3319 = vrot.lane.b32.xlu1 %v3318_v52, %s3508_s28  ;;  %v3368_v52 = vld [vmem:[%s4234_s10 + $0x8] sm:$0xff]  }
 0x601   :  { %v937_v55 = vpop.f32.mrb[28].mxu1 }
 0x602   :  { %v3112_v58 = vpop.f32.mrb[29].mxu1 }
 0x603   :  { %v940_v62 = vpop.f32.mrb[30].mxu1 }
 0x604   :  { %v3113_v45 = vpop.f32.mrb[31].mxu1 }
 0x609   :  { %v1033_v59 = vpop.f32.mrb[32].mxu1 }
 0x60a   :  { %v3124_v60 = vpop.f32.mrb[33].mxu1 }
 0x60b   :  { %v1036_v63 = vpop.f32.mrb[34].mxu1  ;;  %v2856_v60 = vld [vmem:[%s4232_s8] ss:$0 sm:$0xff] }
 0x60c   :  { %v3125_v0 = vpop.f32.mrb[35].mxu1 }
 0x632   :  { %v985_v2 = vpop.f32.mrb[24].mxu0 }
 0x633   :  { %v3323_v4 = vpack.i.bf16 %v985_v2, %v937_v55  ;;  %v3118_v5 = vpop.f32.mrb[25].mxu0  ;;  %v2857_v2 = vld [vmem:[%s4233_s9] ss:$0 sm:$0xff] }
 0x634   :  { %v988_v6 = vpop.f32.mrb[26].mxu0 }
 0x635   :  { %v3119_v7 = vpop.f32.mrb[27].mxu0  ;;  %3324 = vrot.lane.b32.xlu0 %v3323_v4, %s3509_s18 }
 0x636   :  { %v3369_v7 = vld [vmem:[%s4236_s12] sm:$0xff]  }
 0x63a   :  { %v1081_v8 = vpop.f32.mrb[28].mxu0 }
 0x63b   :  { %v3328_v9 = vpack.i.bf16 %v1081_v8, %v1033_v59  ;;  %v3130_v10 = vpop.f32.mrb[29].mxu0  ;;  %v3370_v8 = vld [vmem:[%s4236_s12 + $0x8] sm:$0xff]  }
 0x63c   :  { %v1084_v11 = vpop.f32.mrb[30].mxu0  ;;  %v3372_v10 = vld [vmem:[%s4236_s12 + $0x18] sm:$0xff]  }
 0x63d   :  { %v3131_v12 = vpop.f32.mrb[31].mxu0  ;;  %3329 = vrot.lane.b32.xlu1 %v3328_v9, %s3510_s2  ;;  %v3371_v9 = vld [vmem:[%s4236_s12 + $0x10] sm:$0xff]   ;;  %v2858_v11 = vld [vmem:[%s4235_s11] ss:$0 sm:$0xff] }
 0x672   :  { %v3320_v14 = vpop.permute.xlu1 %3319 }
 0x673   :  { %v3322_v61 = vunpack.i.h.bf16 %v3320_v14  ;;  %v3321_v18 = vunpack.i.l.bf16 %v3320_v14 }
 0x675   :  { %v1112_v42 = vsel %vm216_vm2, %v793_v35, %v3322_v61  ;;  %v1111_v51 = vsel %vm216_vm2, %v745_v39, %v3321_v18 }
 0x6a7   :  { %v3325_v17 = vpop.permute.xlu0 %3324 }
 0x6a8   :  { %v3327_v19 = vunpack.i.h.bf16 %v3325_v17  ;;  %v3326_v20 = vunpack.i.l.bf16 %v3325_v17 }
 0x6aa   :  { %v1115_v22 = vsel %vm1113_vm4, %v1112_v42, %v3327_v19  ;;  %v1114_v23 = vsel %vm1113_vm4, %v1111_v51, %v3326_v20 }
 0x6af   :  { %v3330_v50 = vpop.permute.xlu1 %3329 }
 0x6b0   :  { %v3332_v16 = vunpack.i.h.bf16 %v3330_v50  ;;  %v3331_v21 = vunpack.i.l.bf16 %v3330_v50 }
 0x6b2   :  { %v1118_v24 = vsel %vm1116_vm5, %v1115_v22, %v3332_v16  ;;  %v1117_v25 = vsel %vm1116_vm5, %v1114_v23, %v3331_v21 }
 0x6b3   :  { %v1119_v26 = vpack.c.bf16 %v1118_v24, %v1117_v25 }
 0x6b5   :  { %3137 = vmatmul.mubr.msk.bf16.vlgmr.msra.gmra.mrb[36].mxu1 %vm59_vm0, %v1119_v26 }
 0x6b6   :  { %3156 = vmatprep.mubr.msk.bf16.mxu1 %vm3502_vm1, %v3501_v15  ;;  %3149 = vmatpush3.bf16.msra.mxu1 %v3369_v7 }
 0x6b7   :  { %3150 = vmatprep.subr.bf16.mxu1 %v3501_v15 }
 0x6ba   :  { %3151 = vmatpush3.bf16.msra.mxu1 %v3370_v8 }
 0x6bb   :  { %3152 = vmatprep.subr.bf16.mxu1 %v3501_v15 }
 0x6be   :  { %3153 = vmatpush3.bf16.msra.mxu1 %v3371_v9 }
 0x6bf   :  { %3154 = vmatprep.subr.bf16.mxu1 %v3501_v15 }
 0x6c2   :  { %3155 = vmatpush3.bf16.msra.mxu1 %v3372_v10  ;;  %v2869_v10 = vld [vmem:[%s4239_s15] ss:$0 sm:$0xff] }
 0x6c3   :  { %3174 = vmatprep.subr.bf16.mxu1 %v3501_v15 }
 0x788   :  { %v1180_v28 = vpop.f32.mrb[36].mxu1 }
 0x789   :  { %v1181_v29 = vadd.f32 %v2852_v27, %v1180_v28  ;;  %v3138_v33 = vpop.f32.mrb[37].mxu1 }
 0x78a   :  { %v1183_v56 = vpop.f32.mrb[38].mxu1 }
 0x78b   :  { %v1184_v34 = vadd.f32 %v2852_v27, %v1183_v56  ;;  %v3139_v30 = vpop.f32.mrb[39].mxu1  ;;  %v1187_v35 = vadd.f32 %v1181_v29, %v3627_v31 }
 0x78d   :  { %v1191_v36 = vsel %vm59_vm0, %v1187_v35, 0.0  ;;  %v1188_v37 = vadd.f32 %v1184_v34, %v3629_v32  ;;  %v3367_v32 = vld [vmem:[%s4234_s10] sm:$0xff]  }
 0x78e   :  { %1192 = vadd.xlane.f32.xlu0 %v1191_v36  ;;  %3141 = vmatpush3.bf16.msra.mxu0 %v3367_v32  ;;  %v2862_v36 = vld [vmem:[%s4237_s13] ss:$0 sm:$0xff] }
 0x78f   :  { %v1194_v38 = vsel %vm59_vm0, %v1188_v37, 0.0  ;;  %3142 = vmatprep.subr.bf16.mxu0 %v3501_v15 }
 0x790   :  { %1195 = vadd.xlane.f32.xlu1 %v1194_v38 }
 0x792   :  { %3143 = vmatpush3.bf16.msra.mxu0 %v3368_v52 }
 0x793   :  { %3160 = vmatprep.subr.bf16.mxu0 %v3501_v15 }
 0x81b   :  { %v1193_v39 = vpop.xlane.xlu0 %1192 }
 0x81c   :  { %v1197_v40 = vmul.f32 0.03125, %v1193_v39 }
 0x81d   :  { %v1196_v41 = vpop.xlane.xlu1 %1195 }
 0x81e   :  { %v1199_v43 = vsub.f32 %v1187_v35, %v1197_v40  ;;  %v1198_v44 = vmul.f32 0.03125, %v1196_v41 }
 0x820   :  { %v1200_v46 = vsub.f32 %v1188_v37, %v1198_v44  ;;  %v1201_v47 = vmul.f32 %v1199_v43, %v1199_v43 }
 0x822   :  { %v1203_v48 = vsel %vm59_vm0, %v1201_v47, 0.0  ;;  %v1202_v49 = vmul.f32 %v1200_v46, %v1200_v46 }
 0x823   :  { %1204 = vadd.xlane.f32.xlu0 %v1203_v48 }
 0x824   :  { %v1206_v31 = vsel %vm59_vm0, %v1202_v49, 0.0 }
 0x827   :  { %1207 = vadd.xlane.f32.xlu0 %v1206_v31 }
 0x8b0   :  { %v1205_v53 = vpop.xlane.xlu0 %1204 }
 0x8b1   :  { %v1209_v54 = vmul.f32 0.03125, %v1205_v53 }
 0x8b3   :  { %v1211_v57 = vadd.f32 1e-12, %v1209_v54 }
 0x8b4   :  { %v1208_v55 = vpop.xlane.xlu0 %1207 }
 0x8b5   :  { %3419 = vrsqrt.f32 %v1211_v57  ;;  %v1210_v58 = vmul.f32 0.03125, %v1208_v55 }
 0x8b7   :  { %v1212_v62 = vadd.f32 1e-12, %v1210_v58 }
 0x8b9   :  { %3421 = vrsqrt.f32 %v1212_v62 }
 0x8bf   :  { %v3420_v45 = vpop.eup %3419 }
 0x8c0   :  { %v1215_v59 = vmul.f32 %v3420_v45, %v1199_v43  ;;  %v3373_v45 = vld [vmem:[%s4228_s4 + $0x10] sm:$0xff]  }
 0x8c2   :  { %v1223_v0 = vmul.f32 %v2856_v60, %v1215_v59  ;;  %v3374_v59 = vld [vmem:[%s4228_s4 + $0x18] sm:$0xff]  }
 0x8c3   :  { %v3422_v63 = vpop.eup %3421 }
 0x8c4   :  { %v1216_v1 = vmul.f32 %v3422_v63, %v1200_v46  ;;  %v1231_v4 = vadd.f32 %v2857_v2, %v1223_v0 }
 0x8c6   :  { %v1224_v3 = vmul.f32 %v2856_v60, %v1216_v1 }
 0x8c8   :  { %v1232_v5 = vadd.f32 %v2857_v2, %v1224_v3 }
 0x8ca   :  { %v1233_v6 = vpack.c.bf16 %v1232_v5, %v1231_v4 }
 0x8cc   :  { %3145 = vmatmul.mubr.msk.bf16.vlgmr.msra.gmra.mrb[32].mxu0 %vm59_vm0, %v1233_v6 }
 0x8cd   :  { %3164 = vmatprep.mubr.msk.bf16.mxu0 %vm3502_vm1, %v3501_v15  ;;  %3161 = vmatpush3.bf16.msra.mxu0 %v3373_v45 }
 0x8ce   :  { %3162 = vmatprep.subr.bf16.mxu0 %v3501_v15 }
 0x8d1   :  { %3163 = vmatpush3.bf16.msra.mxu0 %v3374_v59 }
 0x8d2   :  { %3168 = vmatprep.subr.bf16.mxu0 %v3501_v15 }
 0x99f   :  { %v1294_v12 = vpop.f32.mrb[32].mxu0 }
 0x9a0   :  { %v1295_v14 = vadd.f32 %v2858_v11, %v1294_v12  ;;  %v3146_v17 = vpop.f32.mrb[33].mxu0 }
 0x9a1   :  { %v1297_v61 = vpop.f32.mrb[34].mxu0 }
 0x9a2   :  { %v1301_v18 = vmul.f32 %v1295_v14, %v1295_v14  ;;  %v1298_v19 = vadd.f32 %v2858_v11, %v1297_v61  ;;  %v3147_v20 = vpop.f32.mrb[35].mxu0  ;;  %v2875_v61 = vld [vmem:[%s4229_s5 + $0x1] ss:$0 sm:$0xff] }
 0x9a4   :  { %v1303_v50 = vmul.f32 %v1301_v18, %v1295_v14  ;;  %v1302_v42 = vmul.f32 %v1298_v19, %v1298_v19 }
 0x9a6   :  { %v1305_v51 = vmul.f32 0.044715, %v1303_v50  ;;  %v1304_v16 = vmul.f32 %v1302_v42, %v1298_v19 }
 0x9a8   :  { %v1307_v21 = vadd.f32 %v1305_v51, %v1295_v14  ;;  %v1306_v22 = vmul.f32 0.044715, %v1304_v16 }
 0x9aa   :  { %v1309_v23 = vmul.f32 0.7978846, %v1307_v21  ;;  %v1308_v24 = vadd.f32 %v1306_v22, %v1298_v19 }
 0x9ac   :  { %3423 = vtanh.f32 %v1309_v23  ;;  %v1310_v25 = vmul.f32 0.7978846, %v1308_v24 }
 0x9ae   :  { %3425 = vtanh.f32 %v1310_v25 }
 0x9b6   :  { %v3424_v26 = vpop.eup %3423 }
 0x9b7   :  { %v1313_v27 = vadd.f32 1.0, %v3424_v26 }
 0x9b8   :  { %v3426_v28 = vpop.eup %3425 }
 0x9b9   :  { %v1315_v29 = vmul.f32 0.5, %v1313_v27  ;;  %v1314_v33 = vadd.f32 1.0, %v3426_v28 }
 0x9bb   :  { %v1316_v56 = vmul.f32 0.5, %v1314_v33  ;;  %v1317_v34 = vmul.f32 %v1315_v29, %v1295_v14 }
 0x9bd   :  { %v1318_v30 = vmul.f32 %v1316_v56, %v1298_v19 }
 0x9bf   :  { %v1319_v35 = vpack.c.bf16 %v1318_v30, %v1317_v34 }
 0x9c1   :  { %3157 = vmatmul.mubr.msk.bf16.vlgmr.msra.gmra.mrb[40].mxu1 %vm1359_vm6, %v1319_v35 }
 0x9c2   :  { %3176 = vmatprep.mubr.msk.bf16.mxu1 %vm3502_vm1, %v3501_v15 }
 0xa94   :  { %v1397_v37 = vpop.f32.mrb[40].mxu1 }
 0xa95   :  { %v1398_v38 = vadd.f32 %v2862_v36, %v1397_v37  ;;  %v3158_v39 = vpop.f32.mrb[41].mxu1 }
 0xa96   :  { %v1400_v40 = vpop.f32.mrb[42].mxu1 }
 0xa97   :  { %v1401_v41 = vadd.f32 %v2862_v36, %v1400_v40  ;;  %v3159_v43 = vpop.f32.mrb[43].mxu1  ;;  %v1404_v44 = vadd.f32 %v1398_v38, %v1231_v4 }
 0xa99   :  { %v1408_v46 = vsel %vm59_vm0, %v1404_v44, 0.0  ;;  %v1405_v47 = vadd.f32 %v1401_v41, %v1232_v5  ;;  %v2868_v5 = vld [vmem:[%s4238_s14] ss:$0 sm:$0xff] }
 0xa9a   :  { %1409 = vadd.xlane.f32.xlu0 %v1408_v46 }
 0xa9b   :  { %v1411_v48 = vsel %vm59_vm0, %v1405_v47, 0.0 }
 0xa9c   :  { %1412 = vadd.xlane.f32.xlu1 %v1411_v48 }
 0xb27   :  { %v1410_v49 = vpop.xlane.xlu0 %1409 }
 0xb28   :  { %v1414_v31 = vmul.f32 0.03125, %v1410_v49 }
 0xb29   :  { %v1413_v32 = vpop.xlane.xlu1 %1412 }
 0xb2a   :  { %v1416_v52 = vsub.f32 %v1404_v44, %v1414_v31  ;;  %v1415_v53 = vmul.f32 0.03125, %v1413_v32 }
 0xb2c   :  { %v1417_v54 = vsub.f32 %v1405_v47, %v1415_v53  ;;  %v1418_v57 = vmul.f32 %v1416_v52, %v1416_v52 }
 0xb2e   :  { %v1420_v55 = vsel %vm59_vm0, %v1418_v57, 0.0  ;;  %v1419_v58 = vmul.f32 %v1417_v54, %v1417_v54 }
 0xb2f   :  { %1421 = vadd.xlane.f32.xlu0 %v1420_v55 }
 0xb30   :  { %v1423_v62 = vsel %vm59_vm0, %v1419_v58, 0.0 }
 0xb31   :  { %1424 = vadd.xlane.f32.xlu1 %v1423_v62 }
 0xbbc   :  { %v1422_v60 = vpop.xlane.xlu0 %1421 }
 0xbbd   :  { %v1426_v63 = vmul.f32 0.03125, %v1422_v60 }
 0xbbe   :  { %v1425_v0 = vpop.xlane.xlu1 %1424 }
 0xbbf   :  { %v1428_v1 = vadd.f32 1e-12, %v1426_v63  ;;  %v1427_v2 = vmul.f32 0.03125, %v1425_v0 }
 0xbc1   :  { %3427 = vrsqrt.f32 %v1428_v1  ;;  %v1429_v3 = vadd.f32 1e-12, %v1427_v2 }
 0xbc3   :  { %3429 = vrsqrt.f32 %v1429_v3  ;;  %v3475_v3 = vld [vmem:[%s4225_s1] ss:$0 sm:$0xff] }
 0xbcb   :  { %v3428_v4 = vpop.eup %3427 }
 0xbcc   :  { %v1432_v6 = vmul.f32 %v3428_v4, %v1416_v52 }
 0xbcd   :  { %v3430_v7 = vpop.eup %3429 }
 0xbce   :  { %v1440_v8 = vmul.f32 %v2868_v5, %v1432_v6  ;;  %v1433_v9 = vmul.f32 %v3430_v7, %v1417_v54 }
 0xbd0   :  { %v1441_v11 = vmul.f32 %v2868_v5, %v1433_v9  ;;  %v3926_v12 = vadd.f32 %v2869_v10, %v1440_v8 }
 0xbd2   :  { %v3928_v14 = vadd.f32 %v2869_v10, %v1441_v11 }
 0xbd4   :  { %v1450_v17 = vpack.c.bf16 %v3928_v14, %v3926_v12 }
 0xbd6   :  { %3165 = vmatmul.mubr.msk.bf16.vlgmr.msra.gmra.mrb[36].mxu0 %vm59_vm0, %v1450_v17 }
 0xbd7   :  { %3170 = vmatprep.mubr.msk.bf16.mxu0 %vm3502_vm1, %v3501_v15 }
 0xca9   :  { %v1513_v18 = vpop.f32.mrb[36].mxu0 }
 0xcaa   :  { %v3166_v19 = vpop.f32.mrb[37].mxu0  ;;  %v1514_v50 = vadd.f32 %v2875_v61, %v1513_v18 }
 0xcab   :  { %v1516_v20 = vpop.f32.mrb[38].mxu0  ;;  %v3476_v19 = vld [vmem:[%s4225_s1 + $0x1] ss:$0 sm:$0xff] }
 0xcac   :  { %v1517_v42 = vadd.f32 %v2875_v61, %v1516_v20  ;;  %v3167_v51 = vpop.f32.mrb[39].mxu0  ;;  %v1540_v22 = vpack.c.bf16 %v1514_v50, %v1514_v50 }
 0xcae   :  { %v3338_v16 = vpack.i.bf16 %v1517_v42, %v1514_v50  ;;  %v3940_v21 = vpack.c.bf16 %v1517_v42, %v1517_v42 }
 0xcb0   :  { %3339 = vrot.lane.b32.xlu1 %v3338_v16, %s3503_s3  ;;  %3334 = vrot.lane.b32.xlu0 %v3338_v16, %s3504_s20 }
 0xcb4   :  { %3344 = vrot.lane.b32.xlu1 %v3338_v16, %s3505_s21  ;;  %1598 = vrot.lane.b32.xlu0 %v3940_v21, %s3506_s22 }
 0xcb8   :  { %1549 = vrot.lane.b32.xlu1 %v1540_v22, %s3506_s22 }
 0xd22   :  { %v3340_v23 = vpop.permute.xlu1 %3339  ;;  %v3335_v24 = vpop.permute.xlu0 %3334 }
 0xd23   :  { %v3337_v25 = vunpack.i.h.bf16 %v3335_v24  ;;  %v3336_v26 = vunpack.i.l.bf16 %v3335_v24  ;;  %v3342_v27 = vunpack.i.h.bf16 %v3340_v23  ;;  %v3341_v28 = vunpack.i.l.bf16 %v3340_v23 }
 0xd25   :  { %v3946_v29 = vpack.c.bf16 %v3337_v25, %v3337_v25  ;;  %v3948_v33 = vpack.c.bf16 %v3336_v26, %v3336_v26  ;;  %v3955_v35 = vpack.c.bf16 %v3342_v27, %v3342_v27  ;;  %v3957_v36 = vpack.c.bf16 %v3341_v28, %v3341_v28 }
 0xd26   :  { %v3345_v56 = vpop.permute.xlu1 %3344  ;;  %v1599_v34 = vpop.permute.xlu0 %1598 }
 0xd27   :  { %v1604_v30 = vsel %vm216_vm2, %v1599_v34, 0  ;;  %1647 = vrot.lane.b32.xlu1 %v3948_v33, %s3506_s22  ;;  %1696 = vrot.lane.b32.xlu0 %v3946_v29, %s3506_s22  ;;  %v3347_v37 = vunpack.i.h.bf16 %v3345_v56  ;;  %v3346_v38 = vunpack.i.l.bf16 %v3345_v56 }
 0xd28   :  { %3175 = vmatpush3.bf16.xpose.msra.mxu1 %v1604_v30 }
 0xd29   :  { %3186 = vmatprep.subr.bf16.mxu1 %v3501_v15  ;;  %v3965_v41 = vpack.c.bf16 %v3347_v37, %v3347_v37  ;;  %v3967_v43 = vpack.c.bf16 %v3346_v38, %v3346_v38 }
 0xd2a   :  { %v1550_v39 = vpop.permute.xlu1 %1549 }
 0xd2b   :  { %v1555_v40 = vsel %vm216_vm2, %v1550_v39, 0  ;;  %1745 = vrot.lane.b32.xlu1 %v3957_v36, %s3506_s22  ;;  %1794 = vrot.lane.b32.xlu0 %v3955_v35, %s3506_s22 }
 0xd2c   :  { %3169 = vmatpush3.bf16.xpose.msra.mxu0 %v1555_v40 }
 0xd2d   :  { %3180 = vmatprep.subr.bf16.mxu0 %v3501_v15 }
 0xd2f   :  { %1843 = vrot.lane.b32.xlu1 %v3967_v43, %s3506_s22  ;;  %1892 = vrot.lane.b32.xlu0 %v3965_v41, %s3506_s22 }
 0xd30   :  { %3177 = vmatmul.mubr.msk.bf16.vlgmr.msra.gmra.mrb[44].mxu1 %vm216_vm2, %v3940_v21 }
 0xd31   :  { %3188 = vmatprep.mubr.msk.bf16.mxu1 %vm3502_vm1, %v3501_v15 }
 0xd33   :  { %3171 = vmatmul.mubr.msk.bf16.vlgmr.msra.gmra.mrb[40].mxu0 %vm216_vm2, %v1540_v22  ;;  %2036 = vrot.lane.b32.xlu1 %v1540_v22, %s3507_s23 }
 0xd34   :  { %3182 = vmatprep.mubr.msk.bf16.mxu0 %vm3502_vm1, %v3501_v15 }
 0xd99   :  { %v1648_v44 = vpop.permute.xlu1 %1647  ;;  %v1697_v46 = vpop.permute.xlu0 %1696 }
 0xd9a   :  { %v1653_v47 = vsel %vm216_vm2, %v1648_v44, 0  ;;  %v1702_v48 = vsel %vm216_vm2, %v1697_v46, 0 }
 0xd9b   :  { %3181 = vmatpush3.bf16.xpose.msra.mxu0 %v1653_v47  ;;  %3187 = vmatpush3.bf16.xpose.msra.mxu1 %v1702_v48 }
 0xd9c   :  { %3192 = vmatprep.subr.bf16.mxu0 %v3501_v15  ;;  %3198 = vmatprep.subr.bf16.mxu1 %v3501_v15 }
 0xd9d   :  { %v1746_v49 = vpop.permute.xlu1 %1745  ;;  %v1795_v31 = vpop.permute.xlu0 %1794 }
 0xd9e   :  { %v1751_v32 = vsel %vm216_vm2, %v1746_v49, 0  ;;  %v1800_v52 = vsel %vm216_vm2, %v1795_v31, 0 }
 0xda1   :  { %v1844_v53 = vpop.permute.xlu1 %1843  ;;  %v1893_v54 = vpop.permute.xlu0 %1892 }
 0xda2   :  { %3183 = vmatmul.mubr.msk.bf16.vlgmr.msra.gmra.mrb[44].mxu0 %vm216_vm2, %v3948_v33  ;;  %3189 = vmatmul.mubr.msk.bf16.vlgmr.msra.gmra.mrb[48].mxu1 %vm216_vm2, %v3946_v29  ;;  %v1849_v57 = vsel %vm216_vm2, %v1844_v53, 0  ;;  %v1898_v55 = vsel %vm216_vm2, %v1893_v54, 0 }
 0xda3   :  { %3193 = vmatpush3.bf16.xpose.msra.mxu0 %v1751_v32  ;;  %3199 = vmatpush3.bf16.xpose.msra.mxu1 %v1800_v52 }
 0xda4   :  { %3194 = vmatprep.mubr.msk.bf16.mxu0 %vm3502_vm1, %v3501_v15  ;;  %3200 = vmatprep.mubr.msk.bf16.mxu1 %vm3502_vm1, %v3501_v15 }
 0xda5   :  { %3204 = vmatprep.subr.bf16.mxu0 %v3501_v15  ;;  %3210 = vmatprep.subr.bf16.mxu1 %v3501_v15  ;;  %v2037_v58 = vpop.permute.xlu1 %2036 }
 0xda6   :  { %v2042_v62 = vsel %vm707_vm3, %v2037_v58, 0 }
 0xdaa   :  { %3195 = vmatmul.mubr.msk.bf16.vlgmr.msra.gmra.mrb[48].mxu0 %vm216_vm2, %v3957_v36  ;;  %3201 = vmatmul.mubr.msk.bf16.vlgmr.msra.gmra.mrb[52].mxu1 %vm216_vm2, %v3955_v35 }
 0xdab   :  { %3205 = vmatpush3.bf16.xpose.msra.mxu0 %v1849_v57  ;;  %3211 = vmatpush3.bf16.xpose.msra.mxu1 %v1898_v55 }
 0xdac   :  { %3206 = vmatprep.mubr.msk.bf16.mxu0 %vm3502_vm1, %v3501_v15  ;;  %3212 = vmatprep.mubr.msk.bf16.mxu1 %vm3502_vm1, %v3501_v15 }
 0xdad   :  { %3216 = vmatprep.subr.bf16.mxu0 %v3501_v15  ;;  %3222 = vmatprep.subr.bf16.mxu1 %v3501_v15 }
 0xdb2   :  { %3207 = vmatmul.mubr.msk.bf16.vlgmr.msra.gmra.mrb[52].mxu0 %vm216_vm2, %v3967_v43  ;;  %3213 = vmatmul.mubr.msk.bf16.vlgmr.msra.gmra.mrb[56].mxu1 %vm216_vm2, %v3965_v41 }
 0xdb3   :  { %3217 = vmatpush3.bf16.msra.mxu0 %v2042_v62  ;;  %3224 = vmatprep.mubr.msk.bf16.mxu1 %vm3502_vm1, %v3501_v15 }
 0xdb4   :  { %3218 = vmatprep.mubr.msk.bf16.mxu0 %vm3502_vm1, %v3501_v15  ;;  %3228 = vmatprep.subr.bf16.mxu0 %v3501_v15 }
 0xe03   :  { %v1640_v45 = vpop.f32.mrb[44].mxu1 }
 0xe04   :  { %v4021_v59 = vadd.f32 %v3724_v13, %v1640_v45  ;;  %v3178_v60 = vpop.f32.mrb[45].mxu1 }
 0xe05   :  { %v1643_v63 = vpop.f32.mrb[46].mxu1 }
 0xe06   :  { %v3179_v0 = vpop.f32.mrb[47].mxu1  ;;  %v1591_v1 = vpop.f32.mrb[40].mxu0  ;;  %v1943_v2 = vsel %vm216_vm2, %v4021_v59, -inf }
 0xe07   :  { %v1592_v4 = vadd.f32 %v3475_v3, %v1591_v1  ;;  %1944 = vmax.xlane.f32.xlu0 %v1943_v2  ;;  %v3172_v5 = vpop.f32.mrb[41].mxu0 }
 0xe08   :  { %v1594_v6 = vpop.f32.mrb[42].mxu0 }
 0xe09   :  { %v3173_v7 = vpop.f32.mrb[43].mxu0  ;;  %v1940_v8 = vsel %vm216_vm2, %v1592_v4, -inf }
 0xe0a   :  { %1941 = vmax.xlane.f32.xlu1 %v1940_v8 }
 0xe75   :  { %v1689_v13 = vpop.f32.mrb[44].mxu0  ;;  %v1738_v9 = vpop.f32.mrb[48].mxu1 }
 0xe76   :  { %v1690_v10 = vadd.f32 %v3475_v3, %v1689_v13  ;;  %v3184_v11 = vpop.f32.mrb[45].mxu0  ;;  %v3190_v17 = vpop.f32.mrb[49].mxu1  ;;  %v1739_v20 = vadd.f32 %v3476_v19, %v1738_v9 }
 0xe77   :  { %v1692_v61 = vpop.f32.mrb[46].mxu0  ;;  %v1741_v18 = vpop.f32.mrb[50].mxu1 }
 0xe78   :  { %v3185_v50 = vpop.f32.mrb[47].mxu0  ;;  %v3191_v42 = vpop.f32.mrb[51].mxu1  ;;  %v1946_v51 = vsel %vm216_vm2, %v1690_v10, -inf  ;;  %v1949_v16 = vsel %vm216_vm2, %v1739_v20, -inf }
 0xe79   :  { %1947 = vmax.xlane.f32.xlu0 %v1946_v51 }
 0xe7d   :  { %v1787_v22 = vpop.f32.mrb[48].mxu0  ;;  %1950 = vmax.xlane.f32.xlu0 %v1949_v16  ;;  %v1836_v23 = vpop.f32.mrb[52].mxu1 }
 0xe7e   :  { %v1788_v24 = vadd.f32 %v3475_v3, %v1787_v22  ;;  %v4034_v25 = vadd.f32 %v3476_v19, %v1836_v23  ;;  %v3196_v26 = vpop.f32.mrb[49].mxu0  ;;  %v3202_v27 = vpop.f32.mrb[53].mxu1 }
 0xe7f   :  { %v1790_v28 = vpop.f32.mrb[50].mxu0  ;;  %v1839_v56 = vpop.f32.mrb[54].mxu1 }
 0xe80   :  { %v3197_v34 = vpop.f32.mrb[51].mxu0  ;;  %v3203_v30 = vpop.f32.mrb[55].mxu1  ;;  %v1952_v37 = vsel %vm216_vm2, %v1788_v24, -inf  ;;  %v1955_v38 = vsel %vm216_vm2, %v4034_v25, -inf }
 0xe81   :  { %1953 = vmax.xlane.f32.xlu1 %v1952_v37  ;;  %1956 = vmax.xlane.f32.xlu0 %v1955_v38 }
 0xe85   :  { %v1885_v39 = vpop.f32.mrb[52].mxu0  ;;  %v1934_v40 = vpop.f32.mrb[56].mxu1 }
 0xe86   :  { %v1886_v44 = vadd.f32 %v3475_v3, %v1885_v39  ;;  %v4039_v46 = vadd.f32 %v3476_v19, %v1934_v40  ;;  %v3208_v47 = vpop.f32.mrb[53].mxu0  ;;  %v3214_v48 = vpop.f32.mrb[57].mxu1 }
 0xe87   :  { %v1888_v49 = vpop.f32.mrb[54].mxu0  ;;  %v1937_v31 = vpop.f32.mrb[58].mxu1 }
 0xe88   :  { %v3209_v32 = vpop.f32.mrb[55].mxu0  ;;  %v3215_v52 = vpop.f32.mrb[59].mxu1  ;;  %v1958_v53 = vsel %vm216_vm2, %v1886_v44, -inf  ;;  %v1961_v54 = vsel %vm216_vm2, %v4039_v46, -inf }
 0xe89   :  { %1959 = vmax.xlane.f32.xlu1 %v1958_v53  ;;  %1962 = vmax.xlane.f32.xlu0 %v1961_v54 }
 0xe94   :  { %v1945_v57 = vpop.xlane.xlu0 %1944 }
 0xe95   :  { %v1965_v55 = vsub.f32 %v4021_v59, %v1945_v57 }
 0xe97   :  { %v1942_v58 = vpop.xlane.xlu1 %1941  ;;  %v1974_v62 = vmul.f32 1.442695, %v1965_v55 }
 0xe98   :  { %v1964_v45 = vsub.f32 %v1592_v4, %v1942_v58 }
 0xe99   :  { %3431 = vpow2.f32 %v1974_v62 }
 0xe9a   :  { %2132 = vrot.lane.b32.xlu1 %v3948_v33, %s3507_s23  ;;  %v1972_v60 = vmul.f32 1.442695, %v1964_v45 }
 0xe9c   :  { %3433 = vpow2.f32 %v1972_v60 }
 0xe9e   :  { %2180 = vrot.lane.b32.xlu1 %v3946_v29, %s3507_s23 }
 0xe9f   :  { %2084 = vrot.lane.b32.xlu0 %v3940_v21, %s3507_s23 }
 0xea3   :  { %v3432_v63 = vpop.eup %3431 }
 0xea4   :  { %v1991_v0 = vsel %vm216_vm2, %v3432_v63, 0.0 }
 0xea6   :  { %v4052_v1 = vpop.eup %3433 }
 0xea7   :  { %v1988_v29 = vsel %vm216_vm2, %v4052_v1, 0.0 }
 0xebe   :  { %1992 = vadd.xlane.f32.xlu0 %v1991_v0 }
 0xec2   :  { %1989 = vadd.xlane.f32.xlu1 %v1988_v29 }
 0xed3   :  { %2228 = vrot.lane.b32.xlu1 %v3957_v36, %s3507_s23 }
 0xf06   :  { %v1948_v21 = vpop.xlane.xlu0 %1947 }
 0xf07   :  { %v1966_v33 = vsub.f32 %v1690_v10, %v1948_v21 }
 0xf09   :  { %v1976_v59 = vmul.f32 1.442695, %v1966_v33 }
 0xf0a   :  { %v1951_v2 = vpop.xlane.xlu0 %1950 }
 0xf0b   :  { %3435 = vpow2.f32 %v1976_v59  ;;  %v1967_v3 = vsub.f32 %v1739_v20, %v1951_v2 }
 0xf0d   :  { %v1978_v4 = vmul.f32 1.442695, %v1967_v3 }
 0xf0e   :  { %v1954_v5 = vpop.xlane.xlu1 %1953  ;;  %v1957_v8 = vpop.xlane.xlu0 %1956 }
 0xf0f   :  { %3437 = vpow2.f32 %v1978_v4  ;;  %v1968_v6 = vsub.f32 %v1788_v24, %v1954_v5  ;;  %v1969_v22 = vsub.f32 %v4034_v25, %v1957_v8 }
 0xf11   :  { %v1980_v7 = vmul.f32 1.442695, %v1968_v6  ;;  %v1982_v23 = vmul.f32 1.442695, %v1969_v22 }
 0xf13   :  { %3439 = vpow2.f32 %v1980_v7 }
 0xf15   :  { %v4058_v13 = vpop.eup %3435 }
 0xf16   :  { %v1960_v9 = vpop.xlane.xlu1 %1959  ;;  %v1963_v11 = vpop.xlane.xlu0 %1962  ;;  %v1994_v36 = vsel %vm216_vm2, %v4058_v13, 0.0 }
 0xf17   :  { %v1970_v17 = vsub.f32 %v1886_v44, %v1960_v9  ;;  %1995 = vadd.xlane.f32.xlu1 %v1994_v36  ;;  %v1971_v24 = vsub.f32 %v4039_v46, %v1963_v11 }
 0xf19   :  { %v4062_v10 = vpop.eup %3437  ;;  %v1984_v61 = vmul.f32 1.442695, %v1970_v17  ;;  %v1986_v26 = vmul.f32 1.442695, %v1971_v24 }
 0xf1a   :  { %v2085_v18 = vpop.permute.xlu0 %2084  ;;  %v1997_v19 = vsel %vm216_vm2, %v4062_v10, 0.0  ;;  %v2133_v27 = vpop.permute.xlu1 %2132 }
 0xf1b   :  { %3441 = vpow2.f32 %v1984_v61  ;;  %v2090_v20 = vsel %vm707_vm3, %v2085_v18, 0  ;;  %1998 = vadd.xlane.f32.xlu0 %v1997_v19  ;;  %v2138_v48 = vsel %vm707_vm3, %v2133_v27, 0 }
 0xf1c   :  { %3223 = vmatpush3.bf16.msra.mxu1 %v2090_v20  ;;  %3443 = vpow2.f32 %v1982_v23 }
 0xf1d   :  { %v4067_v50 = vpop.eup %3439  ;;  %3234 = vmatprep.subr.bf16.mxu1 %v3501_v15  ;;  %3445 = vpow2.f32 %v1986_v26 }
 0xf1e   :  { %v2000_v42 = vsel %vm216_vm2, %v4067_v50, 0.0  ;;  %v2181_v28 = vpop.permute.xlu1 %2180 }
 0xf1f   :  { %2001 = vadd.xlane.f32.xlu1 %v2000_v42  ;;  %v2186_v44 = vsel %vm707_vm3, %v2181_v28, 0 }
 0xf25   :  { %v4072_v51 = vpop.eup %3441 }
 0xf26   :  { %v2006_v16 = vsel %vm216_vm2, %v4072_v51, 0.0  ;;  %v4082_v34 = vpop.eup %3443 }
 0xf27   :  { %2007 = vadd.xlane.f32.xlu1 %v2006_v16  ;;  %v4086_v37 = vpop.eup %3445 }
 0xf31   :  { %2276 = vrot.lane.b32.xlu0 %v3955_v35, %s3507_s23  ;;  %v2003_v35 = vsel %vm216_vm2, %v4082_v34, 0.0 }
 0xf38   :  { %2324 = vrot.lane.b32.xlu1 %v3967_v43, %s3507_s23  ;;  %v2009_v43 = vsel %vm216_vm2, %v4086_v37, 0.0 }
 0xf4b   :  { %v1993_v56 = vpop.xlane.xlu0 %1992 }
 0xf4c   :  { %3447 = vrcp.f32 %v1993_v56 }
 0xf4f   :  { %v1990_v30 = vpop.xlane.xlu1 %1989 }
 0xf50   :  { %3449 = vrcp.f32 %v1990_v30  ;;  %2004 = vadd.xlane.f32.xlu0 %v2003_v35 }
 0xf53   :  { %v2229_v49 = vpop.permute.xlu1 %2228 }
 0xf54   :  { %2010 = vadd.xlane.f32.xlu0 %v2009_v43  ;;  %v2234_v58 = vsel %vm707_vm3, %v2229_v49, 0 }
 0xf56   :  { %v3448_v25 = vpop.eup %3447 }
 0xf57   :  { %v2015_v38 = vmul.f32 %v3448_v25, %v3432_v63 }
 0xf59   :  { %v2029_v39 = vpack.c.bf16 %v2015_v38, %v2015_v38 }
 0xf5a   :  { %v3450_v40 = vpop.eup %3449 }
 0xf5b   :  { %v2013_v46 = vmul.f32 %v3450_v40, %v4052_v1  ;;  %3225 = vmatmul.mubr.msk.bf16.vlgmr.msra.gmra.mrb[60].mxu1 %vm216_vm2, %v2029_v39 }
 0xf5c   :  { %3235 = vmatpush3.bf16.msra.mxu1 %v2186_v44  ;;  %3236 = vmatprep.mubr.msk.bf16.mxu1 %vm3502_vm1, %v3501_v15  ;;  %v3375_v44 = vld [vmem:[%s4230_s6 + $0x10] sm:$0xff]  }
 0xf5d   :  { %v2028_v47 = vpack.c.bf16 %v2013_v46, %v2013_v46  ;;  %3246 = vmatprep.subr.bf16.mxu1 %v3501_v15 }
 0xf5f   :  { %3219 = vmatmul.mubr.msk.bf16.vlgmr.msra.gmra.mrb[56].mxu0 %vm216_vm2, %v2028_v47  ;;  %v3376_v47 = vld [vmem:[%s4230_s6 + $0x18] sm:$0xff]  }
 0xf60   :  { %3229 = vmatpush3.bf16.msra.mxu0 %v2138_v48  ;;  %3230 = vmatprep.mubr.msk.bf16.mxu0 %vm3502_vm1, %v3501_v15 }
 0xf61   :  { %3240 = vmatprep.subr.bf16.mxu0 %v3501_v15 }
 0xf6a   :  { %2372 = vrot.lane.b32.xlu0 %v3965_v41, %s3507_s23 }
 0xfa4   :  { %v1996_v31 = vpop.xlane.xlu1 %1995 }
 0xfa5   :  { %3451 = vrcp.f32 %v1996_v31 }
 0xfa8   :  { %v1999_v32 = vpop.xlane.xlu0 %1998 }
 0xfa9   :  { %3453 = vrcp.f32 %v1999_v32 }
 0xfac   :  { %v2002_v52 = vpop.xlane.xlu1 %2001  ;;  %v2277_v41 = vpop.permute.xlu0 %2276 }
 0xfad   :  { %3455 = vrcp.f32 %v2002_v52  ;;  %v2282_v1 = vsel %vm707_vm3, %v2277_v41, 0 }
 0xfaf   :  { %v3452_v53 = vpop.eup %3451 }
 0xfb0   :  { %v2017_v54 = vmul.f32 %v3452_v53, %v4058_v13 }
 0xfb2   :  { %v2030_v57 = vpack.c.bf16 %v2017_v54, %v2017_v54 }
 0xfb3   :  { %v3454_v55 = vpop.eup %3453 }
 0xfb4   :  { %v2019_v62 = vmul.f32 %v3454_v55, %v4062_v10  ;;  %3231 = vmatmul.mubr.msk.bf16.vlgmr.msra.gmra.mrb[60].mxu0 %vm216_vm2, %v2030_v57  ;;  %v2008_v45 = vpop.xlane.xlu1 %2007 }
 0xfb5   :  { %3241 = vmatpush3.bf16.msra.mxu0 %v2234_v58  ;;  %3457 = vrcp.f32 %v2008_v45  ;;  %3242 = vmatprep.mubr.msk.bf16.mxu0 %vm3502_vm1, %v3501_v15 }
 0xfb6   :  { %v2031_v60 = vpack.c.bf16 %v2019_v62, %v2019_v62  ;;  %3252 = vmatprep.subr.bf16.mxu0 %v3501_v15 }
 0xfb7   :  { %v3456_v63 = vpop.eup %3455 }
 0xfb8   :  { %v2021_v0 = vmul.f32 %v3456_v63, %v4067_v50  ;;  %3237 = vmatmul.mubr.msk.bf16.vlgmr.msra.gmra.mrb[64].mxu1 %vm216_vm2, %v2031_v60  ;;  %v2325_v29 = vpop.permute.xlu1 %2324 }
 0xfb9   :  { %3247 = vmatpush3.bf16.msra.mxu1 %v2282_v1  ;;  %3248 = vmatprep.mubr.msk.bf16.mxu1 %vm3502_vm1, %v3501_v15  ;;  %v2330_v33 = vsel %vm707_vm3, %v2325_v29, 0 }
 0xfba   :  { %v2032_v21 = vpack.c.bf16 %v2021_v0, %v2021_v0  ;;  %3258 = vmatprep.subr.bf16.mxu1 %v3501_v15 }
 0xfbc   :  { %3243 = vmatmul.mubr.msk.bf16.vlgmr.msra.gmra.mrb[64].mxu0 %vm216_vm2, %v2032_v21 }
 0xfbd   :  { %3253 = vmatpush3.bf16.msra.mxu0 %v2330_v33  ;;  %3254 = vmatprep.mubr.msk.bf16.mxu0 %vm3502_vm1, %v3501_v15 }
 0xfbe   :  { %3264 = vmatprep.subr.bf16.mxu0 %v3501_v15 }
 0xfbf   :  { %v3458_v59 = vpop.eup %3457 }
 0xfc0   :  { %v2025_v2 = vmul.f32 %v3458_v59, %v4072_v51 }
 0xfc2   :  { %v2034_v3 = vpack.c.bf16 %v2025_v2, %v2025_v2 }
 0xfc4   :  { %3255 = vmatmul.mubr.msk.bf16.vlgmr.msra.gmra.mrb[68].mxu0 %vm216_vm2, %v2034_v3 }
 0xfc5   :  { %3268 = vmatprep.mubr.msk.bf16.mxu0 %vm3502_vm1, %v3501_v15  ;;  %3265 = vmatpush3.bf16.msra.mxu0 %v3375_v44  ;;  %v2907_v44 = vld [vmem:[%s4233_s9 + $0x1] ss:$0 sm:$0xff] }
 0xfc6   :  { %3266 = vmatprep.subr.bf16.mxu0 %v3501_v15 }
 0xfc9   :  { %3267 = vmatpush3.bf16.msra.mxu0 %v3376_v47 }
 0xfca   :  { %3280 = vmatprep.subr.bf16.mxu0 %v3501_v15 }
 0xfdd   :  { %v2005_v4 = vpop.xlane.xlu0 %2004 }
 0xfde   :  { %3459 = vrcp.f32 %v2005_v4 }
 0xfe1   :  { %v2011_v5 = vpop.xlane.xlu0 %2010 }
 0xfe2   :  { %3461 = vrcp.f32 %v2011_v5 }
 0xfe5   :  { %v2373_v8 = vpop.permute.xlu0 %2372 }
 0xfe6   :  { %v2378_v11 = vsel %vm707_vm3, %v2373_v8, 0 }
 0xfe8   :  { %v3460_v6 = vpop.eup %3459 }
 0xfe9   :  { %v2023_v7 = vmul.f32 %v3460_v6, %v4082_v34  ;;  %v2900_v6 = vld [vmem:[%s4231_s7 + $0x1] ss:$0 sm:$0xff] }
 0xfeb   :  { %v2033_v13 = vpack.c.bf16 %v2023_v7, %v2023_v7 }
 0xfec   :  { %v3462_v9 = vpop.eup %3461 }
 0xfed   :  { %3249 = vmatmul.mubr.msk.bf16.vlgmr.msra.gmra.mrb[68].mxu1 %vm216_vm2, %v2033_v13  ;;  %v2027_v36 = vmul.f32 %v3462_v9, %v4086_v37 }
 0xfee   :  { %3259 = vmatpush3.bf16.msra.mxu1 %v2378_v11  ;;  %3260 = vmatprep.mubr.msk.bf16.mxu1 %vm3502_vm1, %v3501_v15 }
 0xfef   :  { %3272 = vmatprep.subr.bf16.mxu1 %v3501_v15  ;;  %v2035_v17 = vpack.c.bf16 %v2027_v36, %v2027_v36 }
 0xff5   :  { %3261 = vmatmul.mubr.msk.bf16.vlgmr.msra.gmra.mrb[72].mxu1 %vm216_vm2, %v2035_v17 }
 0xff6   :  { %3276 = vmatprep.mubr.msk.bf16.mxu1 %vm3502_vm1, %v3501_v15 }
0x102e   :  { %v2126_v10 = vpop.f32.mrb[60].mxu1 }
0x102f   :  { %v3226_v61 = vpop.f32.mrb[61].mxu1 }
0x1030   :  { %v2129_v18 = vpop.f32.mrb[62].mxu1 }
0x1031   :  { %v3227_v19 = vpop.f32.mrb[63].mxu1 }
0x1032   :  { %v2078_v20 = vpop.f32.mrb[56].mxu0 }
0x1033   :  { %v3220_v50 = vpop.f32.mrb[57].mxu0 }
0x1034   :  { %v2081_v42 = vpop.f32.mrb[58].mxu0 }
0x1035   :  { %v3221_v51 = vpop.f32.mrb[59].mxu0 }
0x1087   :  { %v2174_v16 = vpop.f32.mrb[60].mxu0 }
0x1088   :  { %v3232_v22 = vpop.f32.mrb[61].mxu0 }
0x1089   :  { %v2177_v23 = vpop.f32.mrb[62].mxu0 }
0x108a   :  { %v3233_v24 = vpop.f32.mrb[63].mxu0 }
0x108b   :  { %v2222_v26 = vpop.f32.mrb[64].mxu1 }
0x108c   :  { %v3348_v27 = vpack.i.bf16 %v2222_v26, %v2174_v16  ;;  %v3238_v28 = vpop.f32.mrb[65].mxu1  ;;  %v3378_v26 = vld [vmem:[%s4234_s10 + $0x18] sm:$0xff]  }
0x108d   :  { %v2225_v56 = vpop.f32.mrb[66].mxu1 }
0x108e   :  { %3349 = vrot.lane.b32.xlu1 %v3348_v27, %s3508_s28  ;;  %v3239_v34 = vpop.f32.mrb[67].mxu1 }
0x108f   :  { %v2270_v30 = vpop.f32.mrb[64].mxu0 }
0x1090   :  { %v3244_v35 = vpop.f32.mrb[65].mxu0 }
0x1091   :  { %v2273_v37 = vpop.f32.mrb[66].mxu0 }
0x1092   :  { %v3245_v43 = vpop.f32.mrb[67].mxu0 }
0x1097   :  { %v2366_v25 = vpop.f32.mrb[68].mxu0 }
0x1098   :  { %v3256_v38 = vpop.f32.mrb[69].mxu0 }
0x1099   :  { %v2369_v39 = vpop.f32.mrb[70].mxu0 }
0x109a   :  { %v3257_v40 = vpop.f32.mrb[71].mxu0 }
0x10c0   :  { %v2318_v46 = vpop.f32.mrb[68].mxu1 }
0x10c1   :  { %v3353_v48 = vpack.i.bf16 %v2318_v46, %v2270_v30  ;;  %v3250_v49 = vpop.f32.mrb[69].mxu1 }
0x10c2   :  { %v2321_v31 = vpop.f32.mrb[70].mxu1 }
0x10c3   :  { %3354 = vrot.lane.b32.xlu0 %v3353_v48, %s3509_s18  ;;  %v3251_v32 = vpop.f32.mrb[71].mxu1  ;;  %v3379_v31 = vld [vmem:[%s4236_s12 + $0x20] sm:$0xff]  }
0x10c4   :  { %v3380_v32 = vld [vmem:[%s4236_s12 + $0x28] sm:$0xff]  }
0x10c8   :  { %v2414_v52 = vpop.f32.mrb[72].mxu1 }
0x10c9   :  { %v3358_v53 = vpack.i.bf16 %v2414_v52, %v2366_v25  ;;  %v3262_v54 = vpop.f32.mrb[73].mxu1  ;;  %v2906_v25 = vld [vmem:[%s4232_s8 + $0x1] ss:$0 sm:$0xff]  ;;  %v3381_v52 = vld [vmem:[%s4236_s12 + $0x30] sm:$0xff]  }
0x10ca   :  { %v2417_v57 = vpop.f32.mrb[74].mxu1  ;;  %v2913_v54 = vld [vmem:[%s4235_s11 + $0x1] ss:$0 sm:$0xff] }
0x10cb   :  { %3359 = vrot.lane.b32.xlu1 %v3358_v53, %s3510_s2  ;;  %v3263_v55 = vpop.f32.mrb[75].mxu1  ;;  %v3382_v53 = vld [vmem:[%s4236_s12 + $0x38] sm:$0xff]  }
0x1100   :  { %v3350_v58 = vpop.permute.xlu1 %3349 }
0x1101   :  { %v3352_v45 = vunpack.i.h.bf16 %v3350_v58  ;;  %v3351_v41 = vunpack.i.l.bf16 %v3350_v58 }
0x1103   :  { %v2445_v1 = vsel %vm216_vm2, %v2126_v10, %v3352_v45  ;;  %v2444_v29 = vsel %vm216_vm2, %v2078_v20, %v3351_v41 }
0x1135   :  { %v3355_v62 = vpop.permute.xlu0 %3354 }
0x1136   :  { %v3357_v60 = vunpack.i.h.bf16 %v3355_v62  ;;  %v3356_v63 = vunpack.i.l.bf16 %v3355_v62 }
0x1138   :  { %v2447_v59 = vsel %vm1113_vm4, %v2445_v1, %v3357_v60  ;;  %v2446_v2 = vsel %vm1113_vm4, %v2444_v29, %v3356_v63 }
0x113d   :  { %v3360_v0 = vpop.permute.xlu1 %3359 }
0x113e   :  { %v3362_v21 = vunpack.i.h.bf16 %v3360_v0  ;;  %v3361_v33 = vunpack.i.l.bf16 %v3360_v0 }
0x1140   :  { %v2449_v3 = vsel %vm1116_vm5, %v2447_v59, %v3362_v21  ;;  %v2448_v4 = vsel %vm1116_vm5, %v2446_v2, %v3361_v33 }
0x1141   :  { %v2450_v5 = vpack.c.bf16 %v2449_v3, %v2448_v4 }
0x1143   :  { %3269 = vmatmul.mubr.msk.bf16.vlgmr.msra.gmra.mrb[72].mxu0 %vm59_vm0, %v2450_v5 }
0x1144   :  { %3288 = vmatprep.mubr.msk.bf16.mxu0 %vm3502_vm1, %v3501_v15  ;;  %3281 = vmatpush3.bf16.msra.mxu0 %v3379_v31 }
0x1145   :  { %3282 = vmatprep.subr.bf16.mxu0 %v3501_v15 }
0x1148   :  { %3283 = vmatpush3.bf16.msra.mxu0 %v3380_v32 }
0x1149   :  { %3284 = vmatprep.subr.bf16.mxu0 %v3501_v15 }
0x114c   :  { %3285 = vmatpush3.bf16.msra.mxu0 %v3381_v52 }
0x114d   :  { %3286 = vmatprep.subr.bf16.mxu0 %v3501_v15 }
0x1150   :  { %3287 = vmatpush3.bf16.msra.mxu0 %v3382_v53 }
0x1216   :  { %v2513_v7 = vpop.f32.mrb[72].mxu0 }
0x1217   :  { %v2514_v8 = vadd.f32 %v2900_v6, %v2513_v7  ;;  %v3270_v13 = vpop.f32.mrb[73].mxu0 }
0x1218   :  { %v2516_v9 = vpop.f32.mrb[74].mxu0 }
0x1219   :  { %v2517_v11 = vadd.f32 %v2900_v6, %v2516_v9  ;;  %v3271_v36 = vpop.f32.mrb[75].mxu0  ;;  %v2520_v17 = vadd.f32 %v2514_v8, %v3926_v12 }
0x121a   :  { %v2926_v36 = vld [vmem:[%s4237_s13 + $0x1] ss:$0 sm:$0xff] }
0x121b   :  { %v2526_v10 = vsel %vm59_vm0, %v2520_v17, 0.0  ;;  %v2521_v61 = vadd.f32 %v2517_v11, %v3928_v14  ;;  %v3377_v14 = vld [vmem:[%s4234_s10 + $0x10] sm:$0xff]  }
0x121c   :  { %2527 = vadd.xlane.f32.xlu0 %v2526_v10  ;;  %3273 = vmatpush3.bf16.msra.mxu1 %v3377_v14 }
0x121d   :  { %v2529_v18 = vsel %vm59_vm0, %v2521_v61, 0.0  ;;  %3274 = vmatprep.subr.bf16.mxu1 %v3501_v15 }
0x121e   :  { %2530 = vadd.xlane.f32.xlu1 %v2529_v18 }
0x1220   :  { %3275 = vmatpush3.bf16.msra.mxu1 %v3378_v26 }
0x12a9   :  { %v2528_v19 = vpop.xlane.xlu0 %2527 }
0x12aa   :  { %v2532_v20 = vmul.f32 0.03125, %v2528_v19 }
0x12ab   :  { %v2531_v50 = vpop.xlane.xlu1 %2530 }
0x12ac   :  { %v2534_v42 = vsub.f32 %v2520_v17, %v2532_v20  ;;  %v2533_v51 = vmul.f32 0.03125, %v2531_v50 }
0x12ae   :  { %v2535_v16 = vsub.f32 %v2521_v61, %v2533_v51  ;;  %v2536_v22 = vmul.f32 %v2534_v42, %v2534_v42 }
0x12b0   :  { %v2538_v23 = vsel %vm59_vm0, %v2536_v22, 0.0  ;;  %v2537_v24 = vmul.f32 %v2535_v16, %v2535_v16 }
0x12b1   :  { %2539 = vadd.xlane.f32.xlu0 %v2538_v23 }
0x12b2   :  { %v2541_v12 = vsel %vm59_vm0, %v2537_v24, 0.0 }
0x12b5   :  { %2542 = vadd.xlane.f32.xlu0 %v2541_v12 }
0x133e   :  { %v2540_v27 = vpop.xlane.xlu0 %2539 }
0x133f   :  { %v2544_v28 = vmul.f32 0.03125, %v2540_v27 }
0x1341   :  { %v2546_v56 = vadd.f32 1e-12, %v2544_v28 }
0x1342   :  { %v2543_v34 = vpop.xlane.xlu0 %2542 }
0x1343   :  { %3463 = vrsqrt.f32 %v2546_v56  ;;  %v2545_v30 = vmul.f32 0.03125, %v2543_v34 }
0x1345   :  { %v2547_v35 = vadd.f32 1e-12, %v2545_v30 }
0x1347   :  { %3465 = vrsqrt.f32 %v2547_v35 }
0x134d   :  { %v3464_v37 = vpop.eup %3463 }
0x134e   :  { %v2550_v43 = vmul.f32 %v3464_v37, %v2534_v42 }
0x1350   :  { %v2558_v39 = vmul.f32 %v2906_v25, %v2550_v43 }
0x1351   :  { %v3466_v38 = vpop.eup %3465 }
0x1352   :  { %v2551_v40 = vmul.f32 %v3466_v38, %v2535_v16  ;;  %v2566_v47 = vadd.f32 %v2907_v44, %v2558_v39 }
0x1354   :  { %v2559_v46 = vmul.f32 %v2906_v25, %v2551_v40  ;;  %v2934_v40 = vld [vmem:[%s4238_s14 + $0x1] ss:$0 sm:$0xff]  ;;  %s3511_s14 = smov [#allocation2]  }
0x1356   :  { %v2567_v48 = vadd.f32 %v2907_v44, %v2559_v46 }
0x1358   :  { %v2568_v49 = vpack.c.bf16 %v2567_v48, %v2566_v47 }
0x135a   :  { %3277 = vmatmul.mubr.msk.bf16.vlgmr.msra.gmra.mrb[76].mxu1 %vm59_vm0, %v2568_v49 }
0x142d   :  { %v2631_v57 = vpop.f32.mrb[76].mxu1 }
0x142e   :  { %v2632_v55 = vadd.f32 %v2913_v54, %v2631_v57  ;;  %v3278_v58 = vpop.f32.mrb[77].mxu1 }
0x142f   :  { %v2634_v62 = vpop.f32.mrb[78].mxu1 }
0x1430   :  { %v2638_v45 = vmul.f32 %v2632_v55, %v2632_v55  ;;  %v2635_v41 = vadd.f32 %v2913_v54, %v2634_v62  ;;  %v3279_v60 = vpop.f32.mrb[79].mxu1 }
0x1432   :  { %v2640_v63 = vmul.f32 %v2638_v45, %v2632_v55  ;;  %v2639_v0 = vmul.f32 %v2635_v41, %v2635_v41 }
0x1434   :  { %v2642_v1 = vmul.f32 0.044715, %v2640_v63  ;;  %v2641_v15 = vmul.f32 %v2639_v0, %v2635_v41 }
0x1436   :  { %v2644_v29 = vadd.f32 %v2642_v1, %v2632_v55  ;;  %v2643_v21 = vmul.f32 0.044715, %v2641_v15 }
0x1438   :  { %v2646_v33 = vmul.f32 0.7978846, %v2644_v29  ;;  %v2645_v59 = vadd.f32 %v2643_v21, %v2635_v41 }
0x143a   :  { %3467 = vtanh.f32 %v2646_v33  ;;  %v2647_v2 = vmul.f32 0.7978846, %v2645_v59 }
0x143c   :  { %3469 = vtanh.f32 %v2647_v2 }
0x1444   :  { %v3468_v3 = vpop.eup %3467 }
0x1445   :  { %v2650_v4 = vadd.f32 1.0, %v3468_v3 }
0x1446   :  { %v3470_v5 = vpop.eup %3469 }
0x1447   :  { %v2652_v6 = vmul.f32 0.5, %v2650_v4  ;;  %v2651_v7 = vadd.f32 1.0, %v3470_v5 }
0x1449   :  { %v2653_v8 = vmul.f32 0.5, %v2651_v7  ;;  %v2654_v13 = vmul.f32 %v2652_v6, %v2632_v55 }
0x144b   :  { %v2655_v9 = vmul.f32 %v2653_v8, %v2635_v41 }
0x144d   :  { %v2656_v11 = vpack.c.bf16 %v2655_v9, %v2654_v13 }
0x144f   :  { %3289 = vmatmul.mubr.msk.bf16.vlgmr.msra.gmra.mrb[76].mxu0 %vm1359_vm6, %v2656_v11 }
0x1522   :  { %v2735_v17 = vpop.f32.mrb[76].mxu0 }
0x1523   :  { %v2736_v10 = vadd.f32 %v2926_v36, %v2735_v17  ;;  %v3290_v61 = vpop.f32.mrb[77].mxu0 }
0x1524   :  { %v2738_v18 = vpop.f32.mrb[78].mxu0 }
0x1525   :  { %v2739_v19 = vadd.f32 %v2926_v36, %v2738_v18  ;;  %v3291_v20 = vpop.f32.mrb[79].mxu0  ;;  %v2742_v50 = vadd.f32 %v2736_v10, %v2566_v47  ;;  %v2935_v47 = vld [vmem:[%s4239_s15 + $0x1] ss:$0 sm:$0xff]  ;;  %s2820_s15 = sshll.u32 %s3511_s14, 4  ;;  %s2821_s15 = int_to_ptr.vmem [resolvable:$true] %s2820_s15 }
0x1526   :  { %s3477_s23 = scalar_lea.vmem %s2821_s15, 32  ;;  %p3482_p1 = scmp.lt.s32.totalorder %s2821_s15, %s2821_s15 }
0x1527   :  { %v2748_v42 = vsel %vm59_vm0, %v2742_v50, 0.0  ;;  %v2743_v51 = vadd.f32 %v2739_v19, %v2567_v48  ;;  %p3478_p0 = scmp.ne.s32.totalorder %s2821_s15, %s3477_s23  ;;  %p3483_p2 = scmp.lt.s32.totalorder %s3477_s23, %s3477_s23 }
0x1528   :  { %2749 = vadd.xlane.f32.xlu0 %v2748_v42 }
0x1529   :  { %v2751_v16 = vsel %vm59_vm0, %v2743_v51, 0.0  ;;  %p3484_p3 = por %p3483_p2, %p3482_p1 }
0x152a   :  { %2752 = vadd.xlane.f32.xlu1 %v2751_v16 }
0x152b   :  { %p3485_p4 = pnand %p3484_p3, %p3478_p0 }
0x15b5   :  { %v2750_v22 = vpop.xlane.xlu0 %2749 }
0x15b6   :  { %v2754_v23 = vmul.f32 0.03125, %v2750_v22 }
0x15b7   :  { %v2753_v24 = vpop.xlane.xlu1 %2752 }
0x15b8   :  { %v2756_v12 = vsub.f32 %v2742_v50, %v2754_v23  ;;  %v2755_v14 = vmul.f32 0.03125, %v2753_v24 }
0x15ba   :  { %v2757_v26 = vsub.f32 %v2743_v51, %v2755_v14  ;;  %v2758_v27 = vmul.f32 %v2756_v12, %v2756_v12 }
0x15bc   :  { %v2760_v28 = vsel %vm59_vm0, %v2758_v27, 0.0  ;;  %v2759_v56 = vmul.f32 %v2757_v26, %v2757_v26 }
0x15bd   :  { %2761 = vadd.xlane.f32.xlu0 %v2760_v28 }
0x15be   :  { %v2763_v34 = vsel %vm59_vm0, %v2759_v56, 0.0 }
0x15bf   :  { %2764 = vadd.xlane.f32.xlu1 %v2763_v34 }
0x164a   :  { %v2762_v30 = vpop.xlane.xlu0 %2761 }
0x164b   :  { %v2766_v35 = vmul.f32 0.03125, %v2762_v30 }
0x164c   :  { %v2765_v37 = vpop.xlane.xlu1 %2764 }
0x164d   :  { %v2768_v43 = vadd.f32 1e-12, %v2766_v35  ;;  %v2767_v25 = vmul.f32 0.03125, %v2765_v37 }
0x164f   :  { %3471 = vrsqrt.f32 %v2768_v43  ;;  %v2769_v38 = vadd.f32 1e-12, %v2767_v25 }
0x1651   :  { %3473 = vrsqrt.f32 %v2769_v38 }
0x1659   :  { %v3472_v39 = vpop.eup %3471 }
0x165a   :  { %v2772_v44 = vmul.f32 %v3472_v39, %v2756_v12 }
0x165b   :  { %v3474_v46 = vpop.eup %3473 }
0x165c   :  { %v2780_v48 = vmul.f32 %v2934_v40, %v2772_v44  ;;  %v2773_v49 = vmul.f32 %v3474_v46, %v2757_v26 }
0x165e   :  { %v2781_v31 = vmul.f32 %v2934_v40, %v2773_v49  ;;  %v2788_v32 = vadd.f32 %v2935_v47, %v2780_v48 }
0x1660   :  { %v2789_v52 = vadd.f32 %v2935_v47, %v2781_v31  ;;  %v2790_v53 = vsel %vm59_vm0, %v2788_v32, 0.0 }
0x1661   :  { %v2791_v54 = vrot.slane %v2790_v53, 4 }
0x1662   :  { %v2797_v57 = vsel %vm59_vm0, %v2789_v52, 0.0 }
0x1663   :  { %v2792_v55 = vadd.f32 %v2791_v54, %v2790_v53  ;;  %v2798_v58 = vrot.slane %v2797_v57, 4 }
0x1665   :  { %v2793_v62 = vrot.slane %v2792_v55, 2  ;;  %v2799_v45 = vadd.f32 %v2798_v58, %v2797_v57 }
0x1667   :  { %v2794_v41 = vadd.f32 %v2793_v62, %v2792_v55  ;;  %v2800_v60 = vrot.slane %v2799_v45, 2 }
0x1669   :  { %v2795_v63 = vrot.slane %v2794_v41, 1  ;;  %v2801_v0 = vadd.f32 %v2800_v60, %v2799_v45 }
0x166b   :  { %v2796_v1 = vadd.f32 %v2795_v63, %v2794_v41  ;;  %v2802_v15 = vrot.slane %v2801_v0, 1 }
0x166d   :  { %v2803_v29 = vadd.f32 %v2802_v15, %v2801_v0  ;;  %v2805_v21 = vmul.f32 0.125, %v2796_v1 }
0x166f   :  { %v2806_v33 = vmul.f32 0.125, %v2803_v29 }
0x1671   :  { %v2810_v59 = vsel %vm2809_vm7, %v2806_v33, %v2805_v21 }
0x1672   :  { %2813 = vst.msk [vmem:[#allocation2] sm:$0x3] %vm2812_vm8, %v2810_v59 }
0x1673   :  { %3488 = shalt.err (!%p3485_p4)
}
0x1674   :  { %s3489_s28 = scalar_lea.hbm %s4240_s16, 32 }
0x1675   :  { %p3490_p5 = scmp.ne.s32.totalorder %s4240_s16, %s3489_s28  ;;  %p3493_p6 = scmp.lt.u32.totalorder %s3489_s28, %s4240_s16 }
0x1677   :  { %p3495_p7 = pnand %p3493_p6, %p3490_p5 }
0x1679   :  { %3498 = shalt.err (!%p3495_p7)
}
0x167a   :  { %2823 = dma.vmem_to_hbm [thread:$0]  %s2821_s15, 32, %s4240_s16, [#allocation3]  }
0x167b   :  { %3499 = dma.done.wait [#allocation3], 32  }
0x167c   :  { %3500 = vsyncadd [#allocation3], 4294967264 }
0x167d   :  { %2827 = vsyncpa [#allocation3], 1 }

</bundles_post_ra>
